<compile_context>
chip_gen: v7x
topology: tpu7x:2x2x1
jax: 0.10.0
libtpu: 0.0.40
codegen_flags: <defaults>
</compile_context>

<pallas_src>
import functools

import jax
import jax.numpy as jnp
import numpy as np
from jax.experimental import pallas as pl
from jax.experimental.pallas import tpu as pltpu

VMEM_SPEC = pl.BlockSpec(memory_space=pltpu.MemorySpace.VMEM)


# ---------------------------------------------------------------------------
# Fused Pallas kernel: one grid step == one TransformerConv layer (+ pool);
# the last grid step also runs the MLP head.
# ---------------------------------------------------------------------------

def fused_transformer_kernel(x0_ref, adj_ref, ea_ref, oh_ref,
                             wf_ref, bf_ref, wet_ref,
                             w1t_ref, b1_ref, w2t_ref, b2_ref,
                             out_ref, x_scr, gf_scr,
                             *, heads, head_dim, num_graphs):
    """Refs:
      x0:  (N, D)        initial node embeddings (consumed at layer 0)
      adj: (N, N)        adj[i, j] = 1 if edge j -> i exists (dst x src)
      ea:  (N, N, Fe)    dense raw edge attributes (0 where no edge)
      oh:  (N, G)        one-hot graph membership (node x graph)
      wf:  (1, D, 4D)    this layer's fused [Wq | Wk | Wv | Wskip]^T
      bf:  (1, 1, 4D)    fused biases [bq | bk | bv | bskip]
      wet: (1, Fe, D)    this layer's edge projection W_e^T (no bias, as in PyG)
      w1t/b1/w2t/b2      MLP head weights (used only on the last layer)
      out: (G, 1)        graph-level prediction
      x_scr:  (N, D)     node features carried across layers (VMEM scratch)
      gf_scr: (G, D)     pooled-feature accumulator (VMEM scratch)
    """
    layer = pl.program_id(0)
    last = pl.num_programs(0) - 1

    @pl.when(layer == 0)
    def _init():
        x_scr[...] = x0_ref[...]
        gf_scr[...] = jnp.zeros_like(gf_scr)
        out_ref[...] = jnp.zeros_like(out_ref)

    x = x_scr[...]                                    # (N, D)
    adj = adj_ref[...]                                # (N, N)
    ea = ea_ref[...]                                  # (N, N, Fe)
    wf = wf_ref[0]                                    # (D, 4D)
    bf = bf_ref[0]                                    # (1, 4D)
    wet = wet_ref[0]                                  # (Fe, D)

    N, D = x.shape
    Fe = ea.shape[-1]
    H, C = heads, head_dim

    # --- fused projections: one lane-dense (N, 4D) MXU pass -----------------
    proj = jnp.dot(x, wf, preferred_element_type=jnp.float32) + bf    # (N, 4D)
    q = proj[:, 0 * D:1 * D].reshape(N, H, C)
    k = proj[:, 1 * D:2 * D].reshape(N, H, C)
    v = proj[:, 2 * D:3 * D].reshape(N, H, C)
    skip = proj[:, 3 * D:4 * D]                                        # (N, D)

    wet_r = wet.reshape(Fe, H, C)                                      # (Fe, H, C)

    # --- attention scores, edge term kept in Fe-space (no (N,N,D) tensor) ---
    # qe[h,i,j] = q_i^h . (ea_ij @ We^h) = (q_i^h @ We^h^T) . ea_ij
    qproj = jnp.einsum('ihc,fhc->ihf', q, wet_r,
                       preferred_element_type=jnp.float32)             # (N, H, Fe)
    qk = jnp.einsum('ihc,jhc->hij', q, k,
                    preferred_element_type=jnp.float32)                # (H, N, N)
    qe = jnp.einsum('ihf,ijf->hij', qproj, ea,
                    preferred_element_type=jnp.float32)                # (H, N, N)
    scores = (qk + qe) * (1.0 / float(C) ** 0.5)

    # --- masked softmax over sources j (PyG adds 1e-16 to the denominator) --
    valid = (adj > 0.0)[None, :, :]                                    # (1, N, N)
    masked = jnp.where(valid, scores, jnp.float32(-3e38))
    m = jnp.max(masked, axis=-1, keepdims=True)
    p = jnp.where(valid, jnp.exp(masked - m), 0.0)     # exp on masked scores
    denom = jnp.sum(p, axis=-1, keepdims=True) + 1e-16
    alpha = p * pl.reciprocal(denom, approx=True)                      # (H, N, N)

    # --- messages: sum_j alpha_ij (v_j + e_ij); edge part via Fe-space matmul
    msg = jnp.einsum('hij,jhc->ihc', alpha, v,
                     preferred_element_type=jnp.float32)               # (N, H, C)
    aew = jnp.einsum('hij,ijf->ihf', alpha, ea,
                     preferred_element_type=jnp.float32)               # (N, H, Fe)
    msg = msg + jnp.einsum('ihf,fhc->ihc', aew, wet_r,
                           preferred_element_type=jnp.float32)         # (N, H, C)

    out = jnp.maximum(msg.reshape(N, D) + skip, 0.0)   # + root weight, fused ReLU
    x_scr[...] = out

    # --- per-graph global max pool (out >= 0, so mask-mul == masked max) ----
    oh = oh_ref[...]                                                    # (N, G)
    pooled = jnp.concatenate(
        [jnp.max(oh[:, g:g + 1] * out, axis=0, keepdims=True)
         for g in range(num_graphs)], axis=0)                           # (G, D)
    gf_scr[...] = gf_scr[...] + pooled

    # --- MLP head, only on the last layer ------------------------------------
    @pl.when(layer == last)
    def _head():
        g = gf_scr[...]
        h1 = jnp.dot(g, w1t_ref[...], preferred_element_type=jnp.float32) + b1_ref[...]
        h1 = jnp.maximum(h1, 0.0)
        out_ref[...] = (jnp.dot(h1, w2t_ref[...], preferred_element_type=jnp.float32)
                        + b2_ref[...])


# ---------------------------------------------------------------------------
# Wrapper: embedding gather + dense scatter (glue) + ONE pallas_call
# ---------------------------------------------------------------------------

def transformer_forward(params, node_ids, src, dst, edge_attr, batch_ids,
                        num_graphs, heads, head_dim):
    x0 = jnp.take(params["embedding"], node_ids, axis=0)               # (N, D)
    N, D = x0.shape
    Fe = edge_attr.shape[1]
    L = len(params["layers"])

    # dense scatter of connectivity (glue)
    # TODO(synk): dense scatter deduplicates parallel (multigraph) edges; an
    # edge-list input with duplicate (src, dst) pairs would diverge from PyG.
    adj = jnp.zeros((N, N), jnp.float32).at[dst, src].set(1.0)
    ea_dense = jnp.zeros((N, N, Fe), jnp.float32).at[dst, src].set(edge_attr)
    onehot_t = (batch_ids[:, None] == jnp.arange(num_graphs)[None, :]).astype(jnp.float32)

    # stack per-layer weights so the layer grid axis can index them
    wf = jnp.stack([jnp.concatenate([l_["wqt"], l_["wkt"], l_["wvt"], l_["wst"]], axis=1)
                    for l_ in params["layers"]])                        # (L, D, 4D)
    bf = jnp.stack([jnp.concatenate([l_["bq"], l_["bk"], l_["bv"], l_["bs"]], axis=1)
                    for l_ in params["layers"]])                        # (L, 1, 4D)
    wet = jnp.stack([l_["wet"] for l_ in params["layers"]])             # (L, Fe, D)

    kernel = functools.partial(fused_transformer_kernel, heads=heads,
                               head_dim=head_dim, num_graphs=num_graphs)

    const2 = lambda l: (0, 0)
    const3 = lambda l: (0, 0, 0)

    out = pl.pallas_call(
        kernel,
        out_shape=jax.ShapeDtypeStruct((num_graphs, 1), jnp.float32),
        grid_spec=pltpu.PrefetchScalarGridSpec(
            num_scalar_prefetch=0,
            grid=(L,),
            in_specs=[
                pl.BlockSpec((N, D), const2),                    # x0
                pl.BlockSpec((N, N), const2),                    # adj
                pl.BlockSpec((N, N, Fe), const3),                # ea_dense
                pl.BlockSpec((N, num_graphs), const2),           # onehot_t
                pl.BlockSpec((1, D, 4 * D), lambda l: (l, 0, 0)),  # wf (per layer)
                pl.BlockSpec((1, 1, 4 * D), lambda l: (l, 0, 0)),  # bf (per layer)
                pl.BlockSpec((1, Fe, D), lambda l: (l, 0, 0)),     # wet (per layer)
                pl.BlockSpec((D, D), const2),                    # w1t
                pl.BlockSpec((1, D), const2),                    # b1
                pl.BlockSpec((D, 1), const2),                    # w2t
                pl.BlockSpec((1, 1), const2),                    # b2
            ],
            out_specs=pl.BlockSpec((num_graphs, 1), const2),
            scratch_shapes=[pltpu.VMEM((N, D), jnp.float32),
                            pltpu.VMEM((num_graphs, D), jnp.float32)],
        ),
        compiler_params=pltpu.CompilerParams(
            dimension_semantics=("arbitrary",)),   # layers are sequentially dependent
    )(x0, adj, ea_dense, onehot_t, wf, bf, wet,
      params["w1t"], params["b1"], params["w2t"], params["b2"])

    return out.squeeze()


# ---------------------------------------------------------------------------
# Pure-JAX reference (edge-list / segment-op formulation) for validation
# ---------------------------------------------------------------------------

def reference_forward(params, node_ids, src, dst, edge_attr, batch_ids,
                      num_graphs, heads, head_dim):
    x = params["embedding"][node_ids]
    N, D = x.shape
    gf = jnp.zeros((num_graphs, D), jnp.float32)
    for layer in params["layers"]:
        q = x @ layer["wqt"] + layer["bq"][0]
        k = x @ layer["wkt"] + layer["bk"][0]
        v = x @ layer["wvt"] + layer["bv"][0]
        e = edge_attr @ layer["wet"]
        qr = q.reshape(N, heads, head_dim)
        kr = k.reshape(N, heads, head_dim)
        vr = v.reshape(N, heads, head_dim)
        er = e.reshape(-1, heads, head_dim)
        ke = kr[src] + er
        ve = vr[src] + er
        alpha = (qr[dst] * ke).sum(-1) / np.sqrt(head_dim)
        amax = jax.ops.segment_max(alpha, dst, num_segments=N)
        alpha = jnp.exp(alpha - amax[dst])
        denom = jax.ops.segment_sum(alpha, dst, num_segments=N) + 1e-16
        alpha = alpha / denom[dst]
        msg = jax.ops.segment_sum(ve * alpha[:, :, None], dst, num_segments=N)
        x = jax.nn.relu(msg.reshape(N, D) + x @ layer["wst"] + layer["bs"][0])
        gf = gf + jax.ops.segment_max(x, batch_ids, num_segments=num_graphs)
    gf = jax.nn.relu(gf @ params["w1t"] + params["b1"][0])
    out = gf @ params["w2t"] + params["b2"][0]
    return out.squeeze()


# ---------------------------------------------------------------------------
# Deterministic parameter initialization (synthetic, no checkpoint)
# ---------------------------------------------------------------------------

def init_params(key, num_layers, hidden, edge_dim):
    keys = iter(jax.random.split(key, 8 + num_layers * 12))

    def dense(shape, scale):
        return jax.random.normal(next(keys), shape, jnp.float32) * scale

    params = {"embedding": dense((100, hidden), 0.5)}
    layers = []
    for _ in range(num_layers):
        layers.append({
            "wqt": dense((hidden, hidden), 0.1), "bq": dense((1, hidden), 0.05),
            "wkt": dense((hidden, hidden), 0.1), "bk": dense((1, hidden), 0.05),
            "wvt": dense((hidden, hidden), 0.1), "bv": dense((1, hidden), 0.05),
            "wet": dense((edge_dim, hidden), 0.1),                 # lin_edge (no bias)
            "wst": dense((hidden, hidden), 0.1), "bs": dense((1, hidden), 0.05),
        })
    params["layers"] = layers
    params["w1t"] = dense((hidden, hidden), 0.1)
    params["b1"] = dense((1, hidden), 0.05)
    params["w2t"] = dense((hidden, 1), 0.1)
    params["b2"] = dense((1, 1), 0.05)
    return params


if __name__ == "__main__":
    num_hidden_layers = 2
    num_hidden_channels = 32
    num_heads = 4
    num_edge_features = 4
    head_dim = num_hidden_channels // num_heads

    nodes_per_graph = 8
    num_graphs = 2
    N = nodes_per_graph * num_graphs

    key = jax.random.PRNGKey(0)
    k_param, k_node, k_edge = jax.random.split(key, 3)
    params = init_params(k_param, num_hidden_layers, num_hidden_channels, num_edge_features)

    # synthetic graph batch (2 graphs of 8 nodes; each node sends to +1,+2,+3 mod 8)
    node_ids = jax.random.randint(k_node, (N,), 0, 100, dtype=jnp.int32)
    src_list, dst_list = [], []
    for g in range(num_graphs):
        off = g * nodes_per_graph
        for i in range(nodes_per_graph):
            for d in (1, 2, 3):
                src_list.append(off + i)
                dst_list.append(off + (i + d) % nodes_per_graph)
    src = jnp.array(src_list, jnp.int32)
    dst = jnp.array(dst_list, jnp.int32)
    edge_attr = jax.random.normal(k_edge, (len(src_list), num_edge_features), jnp.float32)
    batch_ids = jnp.repeat(jnp.arange(num_graphs, dtype=jnp.int32), nodes_per_graph)

    out = transformer_forward(params, node_ids, src, dst, edge_attr, batch_ids,
                              num_graphs, num_heads, head_dim)
    out = jax.block_until_ready(out)

    ref = reference_forward(params, node_ids, src, dst, edge_attr, batch_ids,
                            num_graphs, num_heads, head_dim)
    ref = jax.block_until_ready(ref)

    assert out.shape == (num_graphs,)
    # slightly looser tolerance than before: softmax uses the approximate EUP reciprocal
    np.testing.assert_allclose(np.asarray(out), np.asarray(ref), rtol=5e-3, atol=5e-3)
    print("KERNEL_OK")
</pallas_src>

<mosaic_0001>
module attributes {stable_mosaic.version = 11 : i64} {
  func.func @fused_transformer_kernel(%arg0: i32, %arg1: memref<16x32xf32, #tpu.memory_space<vmem>>, %arg2: memref<16x16xf32, #tpu.memory_space<vmem>>, %arg3: memref<16x16x4xf32, #tpu.memory_space<vmem>>, %arg4: memref<16x2xf32, #tpu.memory_space<vmem>>, %arg5: memref<1x32x128xf32, #tpu.memory_space<vmem>>, %arg6: memref<1x1x128xf32, #tpu.memory_space<vmem>>, %arg7: memref<1x4x32xf32, #tpu.memory_space<vmem>>, %arg8: memref<32x32xf32, #tpu.memory_space<vmem>>, %arg9: memref<1x32xf32, #tpu.memory_space<vmem>>, %arg10: memref<32x1xf32, #tpu.memory_space<vmem>>, %arg11: memref<1x1xf32, #tpu.memory_space<vmem>>, %arg12: memref<2x1xf32, #tpu.memory_space<vmem>>, %arg13: memref<16x32xf32, #tpu.memory_space<vmem>>, %arg14: memref<2x32xf32, #tpu.memory_space<vmem>>) attributes {dimension_semantics = [#tpu.dimension_semantics<arbitrary>], iteration_bounds = array<i64: 2>, scalar_prefetch = 0 : i64, scratch_operands = 2 : i64, tpu.core_type = #tpu.core_type<tc>, window_params = [{pipeline_mode = #tpu.pipeline_mode<synchronous>, transform_indices = @transform_0, window_bounds = array<i64: 16, 32>}, {pipeline_mode = #tpu.pipeline_mode<synchronous>, transform_indices = @transform_1, window_bounds = array<i64: 16, 16>}, {pipeline_mode = #tpu.pipeline_mode<synchronous>, transform_indices = @transform_2, window_bounds = array<i64: 16, 16, 4>}, {pipeline_mode = #tpu.pipeline_mode<synchronous>, transform_indices = @transform_3, window_bounds = array<i64: 16, 2>}, {transform_indices = @transform_4, window_bounds = array<i64: 1, 32, 128>}, {transform_indices = @transform_5, window_bounds = array<i64: 1, 1, 128>}, {transform_indices = @transform_6, window_bounds = array<i64: 1, 4, 32>}, {pipeline_mode = #tpu.pipeline_mode<synchronous>, transform_indices = @transform_7, window_bounds = array<i64: 32, 32>}, {pipeline_mode = #tpu.pipeline_mode<synchronous>, transform_indices = @transform_8, window_bounds = array<i64: 1, 32>}, {pipeline_mode = #tpu.pipeline_mode<synchronous>, transform_indices = @transform_9, window_bounds = array<i64: 32, 1>}, {pipeline_mode = #tpu.pipeline_mode<synchronous>, transform_indices = @transform_10, window_bounds = array<i64: 1, 1>}, {pipeline_mode = #tpu.pipeline_mode<synchronous>, transform_indices = @transform_11, window_bounds = array<i64: 2, 1>}]} {
    %c0_i32 = arith.constant 0 : i32
    %0 = arith.cmpi eq, %arg0, %c0_i32 : i32
    %1 = arith.extui %0 : i1 to i32
    %c0_i32_0 = arith.constant 0 : i32
    %2 = arith.cmpi ne, %1, %c0_i32_0 : i32
    scf.if %2 {
      %c0_41 = arith.constant 0 : index
      %c0_42 = arith.constant 0 : index
      %83 = vector.load %arg1[%c0_41, %c0_42] : memref<16x32xf32, #tpu.memory_space<vmem>>, vector<16x32xf32>
      %c0_43 = arith.constant 0 : index
      %c0_44 = arith.constant 0 : index
      %84 = vector.load %arg13[%c0_43, %c0_44] : memref<16x32xf32, #tpu.memory_space<vmem>>, vector<16x32xf32>
      tpu.vector_store %arg13[%c0_43, %c0_44], %83 {strides = array<i32>} : memref<16x32xf32, #tpu.memory_space<vmem>>, vector<16x32xf32>,
      %cst_45 = arith.constant 0.000000e+00 : f32
      %85 = vector.broadcast %cst_45 : f32 to vector<2x32xf32>
      %c0_46 = arith.constant 0 : index
      %c0_47 = arith.constant 0 : index
      %86 = vector.load %arg14[%c0_46, %c0_47] : memref<2x32xf32, #tpu.memory_space<vmem>>, vector<2x32xf32>
      tpu.vector_store %arg14[%c0_46, %c0_47], %85 {strides = array<i32>} : memref<2x32xf32, #tpu.memory_space<vmem>>, vector<2x32xf32>,
      %cst_48 = arith.constant 0.000000e+00 : f32
      %87 = vector.broadcast %cst_48 : f32 to vector<2x1xf32>
      %c0_49 = arith.constant 0 : index
      %c0_50 = arith.constant 0 : index
      %88 = vector.load %arg12[%c0_49, %c0_50] : memref<2x1xf32, #tpu.memory_space<vmem>>, vector<2x1xf32>
      tpu.vector_store %arg12[%c0_49, %c0_50], %87 {strides = array<i32>} : memref<2x1xf32, #tpu.memory_space<vmem>>, vector<2x1xf32>,
    } else {
    }
    %c0 = arith.constant 0 : index
    %c0_1 = arith.constant 0 : index
    %3 = vector.load %arg13[%c0, %c0_1] : memref<16x32xf32, #tpu.memory_space<vmem>>, vector<16x32xf32>
    %c0_2 = arith.constant 0 : index
    %c0_3 = arith.constant 0 : index
    %4 = vector.load %arg2[%c0_2, %c0_3] : memref<16x16xf32, #tpu.memory_space<vmem>>, vector<16x16xf32>
    %c0_4 = arith.constant 0 : index
    %c0_5 = arith.constant 0 : index
    %c0_6 = arith.constant 0 : index
    %5 = vector.load %arg3[%c0_4, %c0_5, %c0_6] : memref<16x16x4xf32, #tpu.memory_space<vmem>>, vector<16x16x4xf32>
    %c0_7 = arith.constant 0 : index
    %c0_8 = arith.constant 0 : index
    %c0_9 = arith.constant 0 : index
    %6 = vector.load %arg5[%c0_7, %c0_8, %c0_9] : memref<1x32x128xf32, #tpu.memory_space<vmem>>, vector<1x32x128xf32>
    %7 = vector.shape_cast %6 : vector<1x32x128xf32> to vector<32x128xf32>
    %c0_10 = arith.constant 0 : index
    %c0_11 = arith.constant 0 : index
    %c0_12 = arith.constant 0 : index
    %8 = vector.load %arg6[%c0_10, %c0_11, %c0_12] : memref<1x1x128xf32, #tpu.memory_space<vmem>>, vector<1x1x128xf32>
    %9 = vector.shape_cast %8 : vector<1x1x128xf32> to vector<1x128xf32>
    %c0_13 = arith.constant 0 : index
    %c0_14 = arith.constant 0 : index
    %c0_15 = arith.constant 0 : index
    %10 = vector.load %arg7[%c0_13, %c0_14, %c0_15] : memref<1x4x32xf32, #tpu.memory_space<vmem>>, vector<1x4x32xf32>
    %11 = vector.shape_cast %10 : vector<1x4x32xf32> to vector<4x32xf32>
    %cst = arith.constant dense<0.000000e+00> : vector<16x128xf32>
    %12 = tpu.matmul %3, %7, %cst {dimension_numbers = #tpu.dot_dimension_numbers<[1], [0], [0], [1], [0, 0, 1, 1], [], []>} : vector<16x32xf32>, vector<32x128xf32>, vector<16x128xf32> -> vector<16x128xf32>
    %13 = vector.broadcast %9 : vector<1x128xf32> to vector<16x128xf32>
    %14 = arith.addf %12, %13 : vector<16x128xf32>
    %15 = vector.extract_strided_slice %14 {offsets = [0, 0], sizes = [16, 32], strides = [1, 1]} : vector<16x128xf32> to vector<16x32xf32>
    %16 = vector.shape_cast %15 : vector<16x32xf32> to vector<16x4x8xf32>
    %17 = vector.extract_strided_slice %14 {offsets = [0, 32], sizes = [16, 32], strides = [1, 1]} : vector<16x128xf32> to vector<16x32xf32>
    %18 = vector.shape_cast %17 : vector<16x32xf32> to vector<16x4x8xf32>
    %19 = vector.extract_strided_slice %14 {offsets = [0, 64], sizes = [16, 32], strides = [1, 1]} : vector<16x128xf32> to vector<16x32xf32>
    %20 = vector.shape_cast %19 : vector<16x32xf32> to vector<16x4x8xf32>
    %21 = vector.extract_strided_slice %14 {offsets = [0, 96], sizes = [16, 32], strides = [1, 1]} : vector<16x128xf32> to vector<16x32xf32>
    %22 = vector.shape_cast %11 : vector<4x32xf32> to vector<4x4x8xf32>
    "tpu.trace_start"() <{level = 10 : i32, message = "ihc,fhc->ihf"}> : () -> ()
    %cst_16 = arith.constant dense<0.000000e+00> : vector<4x4x16xf32>
    %23 = tpu.matmul %22, %16, %cst_16 {dimension_numbers = #tpu.dot_dimension_numbers<[2], [2], [0], [0], [0, 1, 0, 0, 1, 0], [1], [1]>} : vector<4x4x8xf32>, vector<16x4x8xf32>, vector<4x4x16xf32> -> vector<4x4x16xf32>
    %24 = tpu.transpose %23, [2, 0, 1] : vector<4x4x16xf32> -> vector<16x4x4xf32>
    "tpu.trace_stop"() : () -> ()
    "tpu.trace_start"() <{level = 10 : i32, message = "ihc,jhc->hij"}> : () -> ()
    %cst_17 = arith.constant dense<0.000000e+00> : vector<4x16x16xf32>
    %25 = tpu.matmul %16, %18, %cst_17 {dimension_numbers = #tpu.dot_dimension_numbers<[2], [2], [0], [0], [0, 1, 0, 0, 1, 0], [1], [1]>} : vector<16x4x8xf32>, vector<16x4x8xf32>, vector<4x16x16xf32> -> vector<4x16x16xf32>
    "tpu.trace_stop"() : () -> ()
    "tpu.trace_start"() <{level = 10 : i32, message = "ihf,ijf->hij"}> : () -> ()
    %cst_18 = arith.constant dense<0.000000e+00> : vector<16x16x4xf32>
    %26 = tpu.matmul %5, %24, %cst_18 {dimension_numbers = #tpu.dot_dimension_numbers<[2], [2], [1], [1], [0, 0, 0, 1, 1, 1], [0], [0]>} : vector<16x16x4xf32>, vector<16x4x4xf32>, vector<16x16x4xf32> -> vector<16x16x4xf32>
    %27 = tpu.transpose %26, [2, 0, 1] : vector<16x16x4xf32> -> vector<4x16x16xf32>
    "tpu.trace_stop"() : () -> ()
    %28 = arith.addf %25, %27 : vector<4x16x16xf32>
    %cst_19 = arith.constant 0.353553385 : f32
    %29 = vector.broadcast %cst_19 : f32 to vector<4x16x16xf32>
    %30 = arith.mulf %28, %29 : vector<4x16x16xf32>
    %cst_20 = arith.constant 0.000000e+00 : f32
    %31 = vector.broadcast %cst_20 : f32 to vector<16x16xf32>
    %32 = arith.cmpf ogt, %4, %31 : vector<16x16xf32>
    %33 = vector.shape_cast %32 : vector<16x16xi1> to vector<1x16x16xi1>
    %cst_21 = arith.constant -3.000000e+38 : f32
    %34 = vector.shape_cast %33 : vector<1x16x16xi1> to vector<1x16x16xi1>
    %35 = vector.broadcast %34 : vector<1x16x16xi1> to vector<4x16x16xi1>
    %36 = vector.broadcast %cst_21 : f32 to vector<4x16x16xf32>
    %37 = arith.select %35, %30, %36 : vector<4x16x16xi1>, vector<4x16x16xf32>
    %cst_22 = arith.constant dense<0xFF800000> : vector<4x16xf32>
    %38 = vector.multi_reduction <maximumf>, %37, %cst_22 [2] : vector<4x16x16xf32> to vector<4x16xf32>
    %39 = vector.shape_cast %38 : vector<4x16xf32> to vector<4x16x1xf32>
    %40 = vector.broadcast %39 : vector<4x16x1xf32> to vector<4x16x16xf32>
    %41 = arith.subf %37, %40 : vector<4x16x16xf32>
    %42 = math.exp %41 : vector<4x16x16xf32>
    %cst_23 = arith.constant 0.000000e+00 : f32
    %43 = vector.shape_cast %33 : vector<1x16x16xi1> to vector<1x16x16xi1>
    %44 = vector.broadcast %43 : vector<1x16x16xi1> to vector<4x16x16xi1>
    %45 = vector.broadcast %cst_23 : f32 to vector<4x16x16xf32>
    %46 = arith.select %44, %42, %45 : vector<4x16x16xi1>, vector<4x16x16xf32>
    %cst_24 = arith.constant dense<0.000000e+00> : vector<4x16xf32>
    %47 = vector.multi_reduction <add>, %46, %cst_24 [2] : vector<4x16x16xf32> to vector<4x16xf32>
    %48 = vector.shape_cast %47 : vector<4x16xf32> to vector<4x16x1xf32>
    %cst_25 = arith.constant 1.000000e-16 : f32
    %49 = vector.broadcast %cst_25 : f32 to vector<4x16x1xf32>
    %50 = arith.addf %48, %49 : vector<4x16x1xf32>
    %51 = tpu.reciprocal %50 {approx = true} : vector<4x16x1xf32> -> vector<4x16x1xf32>
    %52 = vector.broadcast %51 : vector<4x16x1xf32> to vector<4x16x16xf32>
    %53 = arith.mulf %46, %52 : vector<4x16x16xf32>
    "tpu.trace_start"() <{level = 10 : i32, message = "hij,jhc->ihc"}> : () -> ()
    %cst_26 = arith.constant dense<0.000000e+00> : vector<4x8x16xf32>
    %54 = tpu.matmul %20, %53, %cst_26 {dimension_numbers = #tpu.dot_dimension_numbers<[0], [2], [2], [1], [0, 1, 0, 2, 1, 1], [1], [0]>} : vector<16x4x8xf32>, vector<4x16x16xf32>, vector<4x8x16xf32> -> vector<4x8x16xf32>
    %55 = tpu.transpose %54, [2, 0, 1] : vector<4x8x16xf32> -> vector<16x4x8xf32>
    "tpu.trace_stop"() : () -> ()
    "tpu.trace_start"() <{level = 10 : i32, message = "hij,ijf->ihf"}> : () -> ()
    %cst_27 = arith.constant dense<0.000000e+00> : vector<16x4x4xf32>
    %56 = tpu.matmul %53, %5, %cst_27 {dimension_numbers = #tpu.dot_dimension_numbers<[2], [1], [0], [2], [0, 1, 0, 0, 1, 2], [1], [0]>} : vector<4x16x16xf32>, vector<16x16x4xf32>, vector<16x4x4xf32> -> vector<16x4x4xf32>
    "tpu.trace_stop"() : () -> ()
    "tpu.trace_start"() <{level = 10 : i32, message = "ihf,fhc->ihc"}> : () -> ()
    %cst_28 = arith.constant dense<0.000000e+00> : vector<4x8x16xf32>
    %57 = tpu.matmul %22, %56, %cst_28 {dimension_numbers = #tpu.dot_dimension_numbers<[0], [2], [2], [0], [0, 1, 0, 2, 1, 0], [1], [1]>} : vector<4x4x8xf32>, vector<16x4x4xf32>, vector<4x8x16xf32> -> vector<4x8x16xf32>
    %58 = tpu.transpose %57, [2, 0, 1] : vector<4x8x16xf32> -> vector<16x4x8xf32>
    "tpu.trace_stop"() : () -> ()
    %59 = arith.addf %55, %58 : vector<16x4x8xf32>
    %60 = vector.shape_cast %59 : vector<16x4x8xf32> to vector<16x32xf32>
    %61 = arith.addf %60, %21 : vector<16x32xf32>
    %cst_29 = arith.constant 0.000000e+00 : f32
    %62 = vector.broadcast %cst_29 : f32 to vector<16x32xf32>
    %63 = arith.maximumf %61, %62 : vector<16x32xf32>
    %c0_30 = arith.constant 0 : index
    %c0_31 = arith.constant 0 : index
    %64 = vector.load %arg13[%c0_30, %c0_31] : memref<16x32xf32, #tpu.memory_space<vmem>>, vector<16x32xf32>
    tpu.vector_store %arg13[%c0_30, %c0_31], %63 {strides = array<i32>} : memref<16x32xf32, #tpu.memory_space<vmem>>, vector<16x32xf32>,
    %c0_32 = arith.constant 0 : index
    %c0_33 = arith.constant 0 : index
    %65 = vector.load %arg4[%c0_32, %c0_33] : memref<16x2xf32, #tpu.memory_space<vmem>>, vector<16x2xf32>
    %66 = vector.extract_strided_slice %65 {offsets = [0, 0], sizes = [16, 1], strides = [1, 1]} : vector<16x2xf32> to vector<16x1xf32>
    %67 = vector.broadcast %66 : vector<16x1xf32> to vector<16x32xf32>
    %68 = arith.mulf %67, %63 : vector<16x32xf32>
    %cst_34 = arith.constant dense<0xFF800000> : vector<32xf32>
    %69 = vector.multi_reduction <maximumf>, %68, %cst_34 [0] : vector<16x32xf32> to vector<32xf32>
    %70 = vector.shape_cast %69 : vector<32xf32> to vector<1x32xf32>
    %71 = vector.extract_strided_slice %65 {offsets = [0, 1], sizes = [16, 1], strides = [1, 1]} : vector<16x2xf32> to vector<16x1xf32>
    %72 = vector.broadcast %71 : vector<16x1xf32> to vector<16x32xf32>
    %73 = arith.mulf %72, %63 : vector<16x32xf32>
    %cst_35 = arith.constant dense<0xFF800000> : vector<32xf32>
    %74 = vector.multi_reduction <maximumf>, %73, %cst_35 [0] : vector<16x32xf32> to vector<32xf32>
    %75 = vector.shape_cast %74 : vector<32xf32> to vector<1x32xf32>
    %76 = tpu.concatenate %70, %75 in 0 : vector<1x32xf32>, vector<1x32xf32> -> vector<2x32xf32>
    %c0_36 = arith.constant 0 : index
    %c0_37 = arith.constant 0 : index
    %77 = vector.load %arg14[%c0_36, %c0_37] : memref<2x32xf32, #tpu.memory_space<vmem>>, vector<2x32xf32>
    %78 = arith.addf %77, %76 : vector<2x32xf32>
    %c0_38 = arith.constant 0 : index
    %c0_39 = arith.constant 0 : index
    %79 = vector.load %arg14[%c0_38, %c0_39] : memref<2x32xf32, #tpu.memory_space<vmem>>, vector<2x32xf32>
    tpu.vector_store %arg14[%c0_38, %c0_39], %78 {strides = array<i32>} : memref<2x32xf32, #tpu.memory_space<vmem>>, vector<2x32xf32>,
    %c1_i32 = arith.constant 1 : i32
    %80 = arith.cmpi eq, %arg0, %c1_i32 : i32
    %81 = arith.extui %80 : i1 to i32
    %c0_i32_40 = arith.constant 0 : i32
    %82 = arith.cmpi ne, %81, %c0_i32_40 : i32
    scf.if %82 {
      %c0_41 = arith.constant 0 : index
      %c0_42 = arith.constant 0 : index
      %83 = vector.load %arg14[%c0_41, %c0_42] : memref<2x32xf32, #tpu.memory_space<vmem>>, vector<2x32xf32>
      %c0_43 = arith.constant 0 : index
      %c0_44 = arith.constant 0 : index
      %84 = vector.load %arg8[%c0_43, %c0_44] : memref<32x32xf32, #tpu.memory_space<vmem>>, vector<32x32xf32>
      %cst_45 = arith.constant dense<0.000000e+00> : vector<2x32xf32>
      %85 = tpu.matmul %83, %84, %cst_45 {dimension_numbers = #tpu.dot_dimension_numbers<[1], [0], [0], [1], [0, 0, 1, 1], [], []>} : vector<2x32xf32>, vector<32x32xf32>, vector<2x32xf32> -> vector<2x32xf32>
      %c0_46 = arith.constant 0 : index
      %c0_47 = arith.constant 0 : index
      %86 = vector.load %arg9[%c0_46, %c0_47] : memref<1x32xf32, #tpu.memory_space<vmem>>, vector<1x32xf32>
      %87 = vector.broadcast %86 : vector<1x32xf32> to vector<2x32xf32>
      %88 = arith.addf %85, %87 : vector<2x32xf32>
      %cst_48 = arith.constant 0.000000e+00 : f32
      %89 = vector.broadcast %cst_48 : f32 to vector<2x32xf32>
      %90 = arith.maximumf %88, %89 : vector<2x32xf32>
      %c0_49 = arith.constant 0 : index
      %c0_50 = arith.constant 0 : index
      %91 = vector.load %arg10[%c0_49, %c0_50] : memref<32x1xf32, #tpu.memory_space<vmem>>, vector<32x1xf32>
      %cst_51 = arith.constant dense<0.000000e+00> : vector<2x1xf32>
      %92 = tpu.matmul %90, %91, %cst_51 {dimension_numbers = #tpu.dot_dimension_numbers<[1], [0], [0], [1], [0, 0, 1, 1], [], []>} : vector<2x32xf32>, vector<32x1xf32>, vector<2x1xf32> -> vector<2x1xf32>
      %c0_52 = arith.constant 0 : index
      %c0_53 = arith.constant 0 : index
      %93 = vector.load %arg11[%c0_52, %c0_53] : memref<1x1xf32, #tpu.memory_space<vmem>>, vector<1x1xf32>
      %94 = vector.broadcast %93 : vector<1x1xf32> to vector<2x1xf32>
      %95 = arith.addf %92, %94 : vector<2x1xf32>
      %c0_54 = arith.constant 0 : index
      %c0_55 = arith.constant 0 : index
      %96 = vector.load %arg12[%c0_54, %c0_55] : memref<2x1xf32, #tpu.memory_space<vmem>>, vector<2x1xf32>
      tpu.vector_store %arg12[%c0_54, %c0_55], %95 {strides = array<i32>} : memref<2x1xf32, #tpu.memory_space<vmem>>, vector<2x1xf32>,
    } else {
    }
    return
  }
  func.func @transform_0(%arg0: i32) -> (i32, i32) {
    %c0_i32 = arith.constant 0 : i32
    %c0_i32_0 = arith.constant 0 : i32
    %c0_i32_1 = arith.constant 0 : i32
    return %c0_i32, %c0_i32_0 : i32, i32
  }
  func.func @transform_1(%arg0: i32) -> (i32, i32) {
    %c0_i32 = arith.constant 0 : i32
    %c0_i32_0 = arith.constant 0 : i32
    %c0_i32_1 = arith.constant 0 : i32
    return %c0_i32, %c0_i32_0 : i32, i32
  }
  func.func @transform_2(%arg0: i32) -> (i32, i32, i32) {
    %c0_i32 = arith.constant 0 : i32
    %c0_i32_0 = arith.constant 0 : i32
    %c0_i32_1 = arith.constant 0 : i32
    %c0_i32_2 = arith.constant 0 : i32
    return %c0_i32, %c0_i32_0, %c0_i32_1 : i32, i32, i32
  }
  func.func @transform_3(%arg0: i32) -> (i32, i32) {
    %c0_i32 = arith.constant 0 : i32
    %c0_i32_0 = arith.constant 0 : i32
    %c0_i32_1 = arith.constant 0 : i32
    return %c0_i32, %c0_i32_0 : i32, i32
  }
  func.func @transform_4(%arg0: i32) -> (i32, i32, i32) {
    %c0_i32 = arith.constant 0 : i32
    %c0_i32_0 = arith.constant 0 : i32
    %c0_i32_1 = arith.constant 0 : i32
    return %arg0, %c0_i32, %c0_i32_0 : i32, i32, i32
  }
  func.func @transform_5(%arg0: i32) -> (i32, i32, i32) {
    %c0_i32 = arith.constant 0 : i32
    %c0_i32_0 = arith.constant 0 : i32
    %c0_i32_1 = arith.constant 0 : i32
    return %arg0, %c0_i32, %c0_i32_0 : i32, i32, i32
  }
  func.func @transform_6(%arg0: i32) -> (i32, i32, i32) {
    %c0_i32 = arith.constant 0 : i32
    %c0_i32_0 = arith.constant 0 : i32
    %c0_i32_1 = arith.constant 0 : i32
    return %arg0, %c0_i32, %c0_i32_0 : i32, i32, i32
  }
  func.func @transform_7(%arg0: i32) -> (i32, i32) {
    %c0_i32 = arith.constant 0 : i32
    %c0_i32_0 = arith.constant 0 : i32
    %c0_i32_1 = arith.constant 0 : i32
    return %c0_i32, %c0_i32_0 : i32, i32
  }
  func.func @transform_8(%arg0: i32) -> (i32, i32) {
    %c0_i32 = arith.constant 0 : i32
    %c0_i32_0 = arith.constant 0 : i32
    %c0_i32_1 = arith.constant 0 : i32
    return %c0_i32, %c0_i32_0 : i32, i32
  }
  func.func @transform_9(%arg0: i32) -> (i32, i32) {
    %c0_i32 = arith.constant 0 : i32
    %c0_i32_0 = arith.constant 0 : i32
    %c0_i32_1 = arith.constant 0 : i32
    return %c0_i32, %c0_i32_0 : i32, i32
  }
  func.func @transform_10(%arg0: i32) -> (i32, i32) {
    %c0_i32 = arith.constant 0 : i32
    %c0_i32_0 = arith.constant 0 : i32
    %c0_i32_1 = arith.constant 0 : i32
    return %c0_i32, %c0_i32_0 : i32, i32
  }
  func.func @transform_11(%arg0: i32) -> (i32, i32) {
    %c0_i32 = arith.constant 0 : i32
    %c0_i32_0 = arith.constant 0 : i32
    %c0_i32_1 = arith.constant 0 : i32
    return %c0_i32, %c0_i32_0 : i32, i32
  }
}

</mosaic_0001>

<bundles_post_ra>
// kernel: tpu_custom_call.1
= control target key start
LH: loop header
LB: loop body
LE: loop exit
PB: predicated region body
PF: predicated region fallthrough
CT: control target
= control target key end

     0   :  { %s9147_s19 = smov 0   ;;  %s10114_s0 = inlined_call_operand.vmem [shape: f32[16,32], index: 0, kind: input, shape index: {}]   ;;  %s10115_s1 = inlined_call_operand.vmem [shape: f32[16,16], index: 1, kind: input, shape index: {}]   ;;  %s10116_s2 = inlined_call_operand.vmem [shape: f32[16,16,4], index: 2, kind: input, shape index: {}]   ;;  %s10117_s3 = inlined_call_operand.vmem [shape: f32[16,2], index: 3, kind: input, shape index: {}]   ;;  %s10118_s4 = inlined_call_operand.vmem [shape: f32[2,32,128], index: 4, kind: input, shape index: {}]   ;;  %s10119_s5 = inlined_call_operand.vmem [shape: f32[2,1,128], index: 5, kind: input, shape index: {}]   ;;  %s10120_s6 = inlined_call_operand.vmem [shape: f32[2,4,32], index: 6, kind: input, shape index: {}]   ;;  %s10121_s7 = inlined_call_operand.vmem [shape: f32[32,32], index: 7, kind: input, shape index: {}]   ;;  %s10122_s8 = inlined_call_operand.vmem [shape: f32[1,32], index: 8, kind: input, shape index: {}]   ;;  %s10123_s9 = inlined_call_operand.vmem [shape: f32[32,1], index: 9, kind: input, shape index: {}]   ;;  %s10124_s10 = inlined_call_operand.<no memory space> [shape: f32[1,1], index: 10, kind: input, shape index: {}]   ;;  %s10125_s11 = inlined_call_operand.vmem [shape: f32[2,1], index: 11, kind: output, shape index: {}]  }
   0x1   :  { %v16_v0 = vstv %s10124_s10 }
   0x2   :  { %17 = vst [vmem:[#allocation4] sm:$0x1] %v16_v0 }
   0x3 LB: > { %s9153_s20 = sadd.s32 4294967295, %s9062_s19   ;;  %p8325_p0 = scmp.ge.s32.totalorder %s9062_s19, 1  ;;  %s9062_s19 = sphi %s9147_s19, %s23_s19  }
   0x4   : > { %p351_p1 = scmp.lt.s32.totalorder %s9062_s19, 3 }
   0x6   : > { %p352_p2 = pnand %p8325_p0, %p351_p1 }
   0x8   : > { %355 = sbr.rel (%p352_p2) target bundleno = 3194 (0xc7a), region = 64 }
   0xf   : > { %p393_p3 = scmp.lt.s32.totalorder %s9153_s20, 1  ;;  %p8329_p4 = scmp.ne.s32.totalorder %s9153_s20, 0 }
  0x10   : > { %v409_v1 = vld [vmem:[%s10114_s0] sm:$0xff] (!%p8329_p4)  ;;  %vm411_vm0 = vcmask (!%p8329_p4), 261120   ;;  %v410_v2 = vld [vmem:[%s10114_s0 + $0x8] sm:$0xff] (!%p8329_p4)  ;;  %vm414_vm1 = vcmask (!%p8329_p4), 254976   ;;  %vm416_vm2 = vcmask (!%p8329_p4), 1024   ;;  %v9064_v3 = vmov (!%p8329_p4), 0.0  }
  0x11   : > { %s9159_s10 = scalar_select %p393_p3, %s9153_s20, 1 }
  0x12   : > { %408 = sbr.rel (%p8329_p4) target bundleno = 25 (0x19), region = 68  ;;  %412 = vst.msk [vmem:[#allocation2] sm:$0xff] (!%p8329_p4), %vm411_vm0, %v409_v1  ;;  %413 = vst.msk [vmem:[#allocation2 + $0x8] sm:$0xff] (!%p8329_p4), %vm411_vm0, %v410_v2 }
  0x13   : > { %s8437_s21 = sshll.u32 %s9159_s10, 5  ;;  %s400_s24 = scalar_lea.vmem %s10119_s5, %s9159_s10  ;;  %415 = vst.msk [vmem:[#allocation3] sm:$0x3] (!%p8329_p4), %vm414_vm1, %v9064_v3 }
  0x14   : > { %s397_s27 = scalar_lea.vmem %s10118_s4, %s8437_s21  ;;  %s8328_s28 = sshll.u32 %s9159_s10, 2  ;;  %417 = vst.msk [vmem:[%s10125_s11] sm:$0x3] (!%p8329_p4), %vm416_vm2, %v9064_v3 }
  0x15   : > { %s9173_s12 = scalar_lea.vmem %s10120_s6, %s8328_s28 }
  0x19 PF: > { %v454_v4 = vld [vmem:[%s397_s27] sm:$0xff]  ;;  %v455_v5 = vld [vmem:[%s397_s27 + $0x8] sm:$0xff]  ;;  %v456_v6 = vld [vmem:[%s397_s27 + $0x10] sm:$0xff]  ;;  %vm466_vm3 = vcmask 261120   ;;  %s9065_s23 = smov 112   ;;  %s9066_s25 = smov 120   ;;  %v582_v25 = vlaneseq }
  0x1a   : > { %v8903_v7 = vpack.c.bf16 %v455_v5, %v454_v4  ;;  %v457_v8 = vld [vmem:[%s397_s27 + $0x18] sm:$0xff]  ;;  %v418_v9 = vld [vmem:[#allocation2] sm:$0xff]  ;;  %v419_v11 = vld [vmem:[#allocation2 + $0x8] sm:$0xff]  ;;  %s9067_s26 = smov 104   ;;  %v10126_v18 = vmov 0.0   ;;  %vm9069_vm4 = vmmov 0  }
  0x1b   : > { %v8907_v10 = vpack.c.bf16 %v457_v8, %v456_v6  ;;  %8598 = vmatprep.mubr.msk.f32.mxu0 %vm466_vm3, %v418_v9  ;;  %v8330_v12 = vld [vmem:[%s400_s24] ss:$0 sm:$0xff]  ;;  %8601 = vmatprep.subr.mxu1 %v10126_v18  ;;  %v9070_v23 = vmov 1983009808   ;;  %v583_v29 = vshrl.u32 %v582_v25, 7  ;;  %s9072_s10 = smov 96  }
  0x1c   : > { %8904 = vmatprep.subr.bf16.mxu0 %v8903_v7  ;;  %v459_v17 = vld [vmem:[%s9173_s12] sm:$0xf]  ;;  %8603 = vmatprep.mubr.msk.f32.mxu1 %vm9069_vm4, %v10126_v18  ;;  %v580_v24 = vunpack.c.l.s4 %v9070_v23  ;;  %v9071_v30 = vmov 1934713408   ;;  %vm774_vm5 = vcmask 64512   ;;  %vm1331_vm6 = vcmask 31744  }
  0x1d   : > { %8906 = vmatpush3.bf16.msra.mxu0 %v8903_v7  ;;  %v597_v31 = vunpack.c.l.s4 %v9071_v30  ;;  %v9274_v4 = vld [vmem:[%s10116_s2] sm:$0xff]  ;;  %v424_v5 = vld [vmem:[%s10116_s2 + $0x10] sm:$0xff]  ;;  %vm3814_vm8 = vcmask 130048   ;;  %vm7288_vm11 = vcmask 1043456   ;;  %s9077_s22 = smov 16   ;;  %vm8034_vm12 = vcmask 195584  }
  0x1e   : > { %8908 = vmatprep.subr.bf16.mxu0 %v8907_v10  ;;  %v581_v28 = vunpack.c.0.s8 %v580_v24  ;;  %vm9711_vm10 = vmpackc.low %vm3814_vm8, %vm3814_vm8  ;;  %vm8091_vm13 = vcmask 1040384   ;;  %vm8095_vm14 = vcmask 254976   ;;  %p8430_p5 = scmp.ne.s32.totalorder %s9153_s20, 1 }
  0x1f   : > { %v598_v36 = vunpack.c.0.s8 %v597_v31  ;;  %vm9082_vm15 = vmmov (!%p8430_p5), 0   ;;  %vm8271_vm0 = vcmask (!%p8430_p5), 1024  }
  0x20   : > { %v9229_v34 = vsub.s32 %v581_v28, %v583_v29 }
  0x21   : > { %8910 = vmatpush3.bf16.msra.mxu0 %v8907_v10  ;;  %v9232_v40 = vsub.s32 %v598_v36, %v583_v29 }
  0x22   : > { %8616 = vmatprep.subr.mxu0 %v10126_v18 }
  0x24   : > { %8599 = vmatmul.mubr.msk.f32.vlgmr.msra.gmra.mrb[0].mxu0 %vm466_vm3, %v419_v11 }
  0x25   : > { %8618 = vmatprep.mubr.msk.f32.mxu0 %vm9069_vm4, %v10126_v18 }
  0xf7   : > { %v8600_v13 = vpop.f32.mrb[0].mxu0 }
  0xf8   : > { %v539_v14 = vpop.f32.mrb[1].mxu0  ;;  %v9196_v16 = vadd.f32 %v8600_v13, %v8330_v12 }
  0xf9   : > { %v9192_v15 = vadd.f32 %v8330_v12, %v539_v14 }
  0xfb   : > { %556 = vrot.lane.b32.xlu1 %v9192_v15, %s9065_s23  ;;  %550 = vrot.lane.b32.xlu0 %v9192_v15, %s9066_s25 }
  0xff   : > { %562 = vrot.lane.b32.xlu1 %v9192_v15, %s9067_s26  ;;  %552 = vrot.lane.b32.xlu0 %v9196_v16, %s9066_s25 }
 0x103   : > { %564 = vrot.lane.b32.xlu1 %v9196_v16, %s9067_s26  ;;  %558 = vrot.lane.b32.xlu0 %v9196_v16, %s9065_s23 }
 0x107   : > { %572 = vrot.lane.b32.xlu1 %v459_v17, %s9065_s23  ;;  %569 = vrot.lane.b32.xlu0 %v459_v17, %s9066_s25  ;;  %s9073_s23 = smov 64   ;;  %s9079_s25 = smov 24  }
 0x10b   : > { %575 = vrot.lane.b32.xlu0 %v459_v17, %s9067_s26  ;;  %s9080_s26 = smov 32  }
 0x130   : > { %646 = vxpose.xlu1.b32.start [1/2] (short) (narrow) %v9192_v15, 8 }
 0x134   : > { %647 = vxpose.xlu1.b32.end [2/2] (short) (narrow) %v9196_v16, 8 }
 0x16d   : > { %v9211_v19 = vpop.permute.xlu1 %556  ;;  %v9213_v20 = vpop.permute.xlu0 %550 }
 0x16e   : > { %678 = vxpose.xlu0.b32.start [1/2] (short) (narrow) %v9213_v20, 8 }
 0x171   : > { %v9216_v21 = vpop.permute.xlu1 %562  ;;  %v9218_v22 = vpop.permute.xlu0 %552 }
 0x172   : > { %742 = vxpose.xlu1.b32.start [1/2] (short) (narrow) %v9216_v21, 8  ;;  %679 = vxpose.xlu0.b32.end [2/2] (short) (narrow) %v9218_v22, 8 }
 0x175   : > { %v9222_v26 = vpop.permute.xlu1 %564  ;;  %v9224_v27 = vpop.permute.xlu0 %558 }
 0x176   : > { %743 = vxpose.xlu1.b32.end [2/2] (short) (narrow) %v9222_v26, 8  ;;  %710 = vxpose.xlu0.b32.start [1/2] (short) (narrow) %v9211_v19, 8 }
 0x179   : > { %v570_v32 = vpop.permute.xlu0 %569  ;;  %v573_v33 = vpop.permute.xlu1 %572 }
 0x17a   : > { %711 = vxpose.xlu0.b32.end [2/2] (short) (narrow) %v9224_v27, 8  ;;  %v578_v35 = vcombine.low %v459_v17, %v573_v33 }
 0x17c   : > { %v585_v38 = vrot.slane %v578_v35, %v9229_v34 }
 0x17d   : > { %v576_v37 = vpop.permute.xlu0 %575 }
 0x17e   : > { %v586_v39 = vcombine.low %v570_v32, %v576_v37 }
 0x180   : > { %v593_v41 = vrot.slane %v586_v39, %v9229_v34 }
 0x182   : > { %v594_v42 = vcombine.low %v585_v38, %v593_v41  ;;  %v595_v43 = vcombine.high %v585_v38, %v593_v41 }
 0x184   : > { %v9236_v44 = vrot.slane %v594_v42, %v9232_v40  ;;  %v9239_v45 = vrot.slane %v595_v43, %v9232_v40 }
 0x186   : > { %10131 = vst [vmem:[#allocation5_spill] sm:$0xff] %v9239_v45  ;;  %v612_v46 = vcombine.low %v9236_v44, %v9239_v45  ;;  %v8333_v47 = vcombine.high %v9236_v44, %v9239_v45 }
 0x188   : > { %v619_v48 = vrot.slane %v612_v46, %v9229_v34  ;;  %v627_v49 = vrot.slane %v8333_v47, %v9229_v34 }
 0x18a   : > { %v629_v50 = vcombine.high %v619_v48, %v627_v49  ;;  %v628_v51 = vcombine.low %v619_v48, %v627_v49  ;;  %v9300_v49 = vld [vmem:[%s10116_s2 + $0x8] sm:$0xff] }
 0x18c   : > { %v636_v52 = vrot.slane %v628_v51, %v9232_v40  ;;  %v643_v56 = vrot.slane %v629_v50, %v9232_v40 }
 0x18e   : > { %v644_v54 = vcombine.high %v636_v52, %v10126_v18  ;;  %v645_v58 = vcombine.high %v643_v56, %v10126_v18 }
 0x194   : > { %3324 = vrot.lane.b32.xlu1 %v9192_v15, %s9072_s10 }
 0x198   : > { %3326 = vrot.lane.b32.xlu1 %v9196_v16, %s9072_s10 }
 0x19c   : > { %3330 = vrot.lane.b32.xlu1 %v9218_v22, %s9072_s10 }
 0x1a0   : > { %3332 = vrot.lane.b32.xlu1 %v9211_v19, %s9072_s10 }
 0x1a3   : > { %3328 = vrot.lane.b32.xlu0 %v9213_v20, %s9072_s10 }
 0x1b0   : > { %v662_v53 = vpop.trf.xlu1 }
 0x1b1   : > { %8602 = vmatpush3.msra.mxu1 %v662_v53 }
 0x1b2   : > { %8604 = vmatmul.mubr.msk.f32.vlgmr.msra.gmra.mrb[0].mxu1 %vm774_vm5, %v636_v52  ;;  %8606 = vmatprep.subr.mxu1 %v10126_v18 }
 0x1b3   : > { %8608 = vmatprep.mubr.msk.f32.mxu1 %vm9069_vm4, %v10126_v18 }
 0x1ee   : > { %v694_v55 = vpop.trf.xlu0 }
 0x1ef   : > { %8607 = vmatpush3.msra.mxu1 %v694_v55  ;;  %v425_v55 = vld [vmem:[%s10116_s2 + $0x18] sm:$0xff] }
 0x1f0   : > { %8609 = vmatmul.mubr.msk.f32.vlgmr.msra.gmra.mrb[2].mxu1 %vm774_vm5, %v644_v54  ;;  %8611 = vmatprep.subr.mxu1 %v10126_v18  ;;  %v9311_v54 = vld [vmem:[%s10116_s2 + $0x20] sm:$0xff] }
 0x1f1   : > { %8613 = vmatprep.mubr.msk.f32.mxu1 %vm9069_vm4, %v10126_v18 }
 0x1f2   : > { %v758_v57 = vpop.trf.xlu1 }
 0x1f3   : > { %8617 = vmatpush3.msra.mxu0 %v758_v57 }
 0x1f4   : > { %8619 = vmatmul.mubr.msk.f32.vlgmr.msra.gmra.mrb[2].mxu0 %vm774_vm5, %v645_v58 }
 0x1f5   : > { %8628 = vmatprep.mubr.msk.f32.mxu0 %vm1331_vm6, %v424_v5  ;;  %v9357_v5 = vld [vmem:[%s10116_s2 + $0x48] sm:$0xff] }
 0x1f6   : > { %v726_v59 = vpop.trf.xlu0 }
 0x1f7   : > { %8612 = vmatpush3.msra.mxu1 %v726_v59  ;;  %v9327_v59 = vld [vmem:[%s10116_s2 + $0x28] sm:$0xff] }
 0x1f8   : > { %8614 = vmatmul.mubr.msk.f32.vlgmr.msra.gmra.mrb[4].mxu1 %vm774_vm5, %v643_v56  ;;  %v428_v56 = vld [vmem:[%s10116_s2 + $0x30] sm:$0xff] }
 0x1f9   : > { %8623 = vmatprep.mubr.msk.f32.mxu1 %vm1331_vm6, %v9274_v4 }
 0x206   : > { %v3325_v6 = vpop.permute.xlu1 %3324 }
 0x20a   : > { %v3327_v7 = vpop.permute.xlu1 %3326 }
 0x20e   : > { %v3331_v8 = vpop.permute.xlu1 %3330 }
 0x212   : > { %v3333_v10 = vpop.permute.xlu1 %3332 }
 0x215   : > { %v3329_v9 = vpop.permute.xlu0 %3328 }
 0x285   : > { %v844_v60 = vpop.f32.mrb[0].mxu1 }
 0x286   : > { %v8605_v61 = vpop.f32.mrb[1].mxu1  ;;  %1067 = vxpose.xlu0.b32.start.end [1/1] (short) (narrow) %v844_v60, 16 }
 0x2c3   : > { %v917_v62 = vpop.f32.mrb[2].mxu1 }
 0x2c4   : > { %1099 = vxpose.xlu0.b32.start.end [1/1] (short) (narrow) %v917_v62, 16  ;;  %v8610_v63 = vpop.f32.mrb[3].mxu1 }
 0x2c5   : > { %v9338_v63 = vld [vmem:[%s10116_s2 + $0x40] sm:$0xff] }
 0x2c7   : > { %v1063_v0 = vpop.f32.mrb[2].mxu0 }
 0x2c8   : > { %v8620_v1 = vpop.f32.mrb[3].mxu0 }
 0x2c9   : > { %1163 = vxpose.xlu0.b32.start.end [1/1] (short) (narrow) %v1063_v0, 16  ;;  %v429_v0 = vld [vmem:[%s10116_s2 + $0x38] sm:$0xff]  ;;  %v432_v1 = vld [vmem:[%s10116_s2 + $0x50] sm:$0xff] }
 0x2cb   : > { %v990_v2 = vpop.f32.mrb[4].mxu1 }
 0x2cc   : > { %1131 = vxpose.xlu1.b32.start.end [1/1] (short) (narrow) %v990_v2, 16  ;;  %v8615_v3 = vpop.f32.mrb[5].mxu1 }
 0x2ee   : > { %3336 = vrot.lane.b32.xlu1 %v9216_v21, %s9072_s10 }
 0x2f2   : > { %3338 = vrot.lane.b32.xlu1 %v9222_v26, %s9072_s10 }
 0x2f6   : > { %3334 = vrot.lane.b32.xlu0 %v9224_v27, %s9072_s10 }
 0x306   : > { %v1083_v11 = vpop.trf.xlu0 }
 0x30a   : > { %v1084_v12 = vpop.trf.xlu0 }
 0x314   : > { %3348 = vxpose.xlu0.b32.start [1/2] (short) (narrow) %v3325_v6, 8 }
 0x318   : > { %3349 = vxpose.xlu0.b32.end [2/2] (short) (narrow) %v3327_v7, 8 }
 0x31b   : > { %3380 = vxpose.xlu1.b32.start [1/2] (short) (narrow) %v3329_v9, 8  ;;  %v9368_v9 = vld [vmem:[%s10116_s2 + $0x60] sm:$0xff] }
 0x31c   : > { %3412 = vxpose.xlu0.b32.start [1/2] (short) (narrow) %v3333_v10, 8  ;;  %v9374_v10 = vld [vmem:[%s10116_s2 + $0x58] sm:$0xff] }
 0x31f   : > { %3381 = vxpose.xlu1.b32.end [2/2] (short) (narrow) %v3331_v8, 8 }
 0x344   : > { %v1115_v13 = vpop.trf.xlu0 }
 0x348   : > { %v1116_v14 = vpop.trf.xlu0 }
 0x34c   : > { %v1147_v17 = vpop.trf.xlu1  ;;  %v1179_v23 = vpop.trf.xlu0 }
 0x34d   : > { %v1195_v24 = vcombine.low %v1083_v11, %v1147_v17  ;;  %v1196_v25 = vcombine.high %v1083_v11, %v1147_v17  ;;  %v1211_v28 = vcombine.low %v1115_v13, %v1179_v23  ;;  %v1212_v29 = vcombine.high %v1115_v13, %v1179_v23  ;;  %v436_v11 = vld [vmem:[%s10116_s2 + $0x70] sm:$0xff]  ;;  %v9399_v23 = vld [vmem:[%s10116_s2 + $0x80] sm:$0xff] }
 0x34f   : > { %v1203_v30 = vrot.slane %v1195_v24, %v9229_v34  ;;  %v1210_v31 = vrot.slane %v1196_v25, %v9229_v34  ;;  %v1219_v32 = vrot.slane %v1211_v28, %v9229_v34  ;;  %v1226_v33 = vrot.slane %v1212_v29, %v9229_v34  ;;  %v9405_v24 = vld [vmem:[%s10116_s2 + $0x78] sm:$0xff]  ;;  %v9414_v25 = vld [vmem:[%s10116_s2 + $0x90] sm:$0xff]  ;;  %v9420_v28 = vld [vmem:[%s10116_s2 + $0x88] sm:$0xff] }
 0x350   : > { %v1148_v35 = vpop.trf.xlu1  ;;  %v1180_v36 = vpop.trf.xlu0 }
 0x351   : > { %v1227_v37 = vcombine.low %v1203_v30, %v1219_v32  ;;  %v1228_v38 = vcombine.high %v1203_v30, %v1219_v32  ;;  %v1243_v39 = vcombine.low %v1210_v31, %v1226_v33  ;;  %v1263_v41 = vcombine.low %v1084_v12, %v1148_v35 }
 0x352   : > { %v1279_v42 = vcombine.low %v1116_v14, %v1180_v36  ;;  %v1244_v48 = vcombine.high %v1210_v31, %v1226_v33  ;;  %v1264_v57 = vcombine.high %v1084_v12, %v1148_v35  ;;  %v1280_v58 = vcombine.high %v1116_v14, %v1180_v36  ;;  %v9387_v12 = vld [vmem:[%s10116_s2 + $0x68] sm:$0xff]  ;;  %v9433_v33 = vld [vmem:[%s10116_s2 + $0x98] sm:$0xff]  ;;  %v9443_v35 = vld [vmem:[%s10116_s2 + $0xa0] sm:$0xff] }
 0x353   : > { %v1235_v43 = vrot.slane %v1227_v37, %v9232_v40  ;;  %v1242_v46 = vrot.slane %v1228_v38, %v9232_v40  ;;  %v1251_v50 = vrot.slane %v1243_v39, %v9232_v40  ;;  %v1271_v51 = vrot.slane %v1263_v41, %v9229_v34  ;;  %v9449_v36 = vld [vmem:[%s10116_s2 + $0xa8] sm:$0xff]  ;;  %v9458_v38 = vld [vmem:[%s10116_s2 + $0xb0] sm:$0xff]  ;;  %v9466_v41 = vld [vmem:[%s10116_s2 + $0xb8] sm:$0xff] }
 0x354   : > { %v1287_v52 = vrot.slane %v1279_v42, %v9229_v34  ;;  %v1258_v62 = vrot.slane %v1244_v48, %v9232_v40  ;;  %v1278_v2 = vrot.slane %v1264_v57, %v9229_v34  ;;  %v1294_v3 = vrot.slane %v1280_v58, %v9229_v34 }
 0x355   : > { %8621 = vmatprep.subr.msk.mxu1 %vm1331_vm6, %v1235_v43  ;;  %v1259_v47 = vcombine.high %v1235_v43, %v10126_v18  ;;  %v1260_v53 = vcombine.high %v1242_v46, %v10126_v18  ;;  %v1261_v61 = vcombine.high %v1251_v50, %v10126_v18 }
 0x356   : > { %8622 = vmatpush3.xpose.msk.msra.mxu1 %vm1331_vm6, %v1235_v43  ;;  %v1295_v60 = vcombine.low %v1271_v51, %v1287_v52  ;;  %v1296_v6 = vcombine.high %v1271_v51, %v1287_v52  ;;  %v1262_v7 = vcombine.high %v1258_v62, %v10126_v18  ;;  %v1311_v13 = vcombine.low %v1278_v2, %v1294_v3  ;;  %v9475_v43 = vld [vmem:[%s10116_s2 + $0xc0] sm:$0xff] }
 0x357   : > { %8626 = vmatprep.subr.msk.mxu0 %vm1331_vm6, %v1259_v47  ;;  %8631 = vmatprep.subr.msk.mxu1 %vm1331_vm6, %v1242_v46  ;;  %v1312_v31 = vcombine.high %v1278_v2, %v1294_v3  ;;  %v9507_v51 = vld [vmem:[%s10116_s2 + $0xe0] sm:$0xff] }
 0x358   : > { %8627 = vmatpush3.xpose.msk.msra.mxu0 %vm1331_vm6, %v1259_v47  ;;  %v1303_v8 = vrot.slane %v1295_v60, %v9232_v40  ;;  %v1310_v17 = vrot.slane %v1296_v6, %v9232_v40  ;;  %v1319_v30 = vrot.slane %v1311_v13, %v9232_v40  ;;  %v9490_v47 = vld [vmem:[%s10116_s2 + $0xc8] sm:$0xff] }
 0x359   : > { %8624 = vmatmul.mubr.msk.f32.vlgmr.msra.gmra.mrb[6].mxu1 %vm1331_vm6, %v9300_v49  ;;  %8636 = vmatprep.subr.msk.mxu0 %vm1331_vm6, %v1260_v53  ;;  %v1326_v42 = vrot.slane %v1312_v31, %v9232_v40 }
 0x35a   : > { %8632 = vmatpush3.xpose.msk.msra.mxu1 %vm1331_vm6, %v1242_v46  ;;  %8633 = vmatprep.mubr.msk.f32.mxu1 %vm1331_vm6, %v9311_v54  ;;  %v1327_v14 = vcombine.high %v1303_v8, %v10126_v18  ;;  %v1328_v29 = vcombine.high %v1310_v17, %v10126_v18  ;;  %v1329_v37 = vcombine.high %v1319_v30, %v10126_v18  ;;  %v9482_v46 = vld [vmem:[%s10116_s2 + $0xd0] sm:$0xff] }
 0x35b   : > { %8629 = vmatmul.mubr.msk.f32.vlgmr.msra.gmra.mrb[4].mxu0 %vm1331_vm6, %v425_v55  ;;  %8641 = vmatprep.subr.msk.mxu1 %vm1331_vm6, %v1251_v50  ;;  %v1330_v48 = vcombine.high %v1326_v42, %v10126_v18  ;;  %v9521_v55 = vld [vmem:[%s10116_s2 + $0xe8] sm:$0xff] }
 0x35c   : > { %8637 = vmatpush3.xpose.msk.msra.mxu0 %vm1331_vm6, %v1260_v53  ;;  %8638 = vmatprep.mubr.msk.f32.mxu0 %vm1331_vm6, %v428_v56  ;;  %v9515_v53 = vld [vmem:[%s10116_s2 + $0xf0] sm:$0xff]  ;;  %v9531_v56 = vld [vmem:[%s10116_s2 + $0xf8] sm:$0xff] }
 0x35d   : > { %8634 = vmatmul.mubr.msk.f32.vlgmr.msra.gmra.mrb[8].mxu1 %vm1331_vm6, %v9327_v59  ;;  %8646 = vmatprep.subr.msk.mxu0 %vm1331_vm6, %v1261_v61  ;;  %10132 = vst [vmem:[#allocation6_spill] sm:$0xff] %v9531_v56 }
 0x35e   : > { %8642 = vmatpush3.xpose.msk.msra.mxu1 %vm1331_vm6, %v1251_v50  ;;  %8643 = vmatprep.mubr.msk.f32.mxu1 %vm1331_vm6, %v9338_v63  ;;  %v9500_v50 = vld [vmem:[%s10116_s2 + $0xd8] sm:$0xff] }
 0x35f   : > { %8639 = vmatmul.mubr.msk.f32.vlgmr.msra.gmra.mrb[6].mxu0 %vm1331_vm6, %v429_v0  ;;  %8651 = vmatprep.subr.msk.mxu1 %vm1331_vm6, %v1258_v62 }
 0x360   : > { %8647 = vmatpush3.xpose.msk.msra.mxu0 %vm1331_vm6, %v1261_v61  ;;  %8648 = vmatprep.mubr.msk.f32.mxu0 %vm1331_vm6, %v432_v1  ;;  %v3337_v39 = vpop.permute.xlu1 %3336 }
 0x361   : > { %8644 = vmatmul.mubr.msk.f32.vlgmr.msra.gmra.mrb[10].mxu1 %vm1331_vm6, %v9357_v5  ;;  %8656 = vmatprep.subr.msk.mxu0 %vm1331_vm6, %v1262_v7 }
 0x362   : > { %8652 = vmatpush3.xpose.msk.msra.mxu1 %vm1331_vm6, %v1258_v62  ;;  %8653 = vmatprep.mubr.msk.f32.mxu1 %vm1331_vm6, %v9368_v9 }
 0x363   : > { %8649 = vmatmul.mubr.msk.f32.vlgmr.msra.gmra.mrb[8].mxu0 %vm1331_vm6, %v9374_v10  ;;  %8661 = vmatprep.subr.msk.mxu1 %vm1331_vm6, %v1303_v8 }
 0x364   : > { %8657 = vmatpush3.xpose.msk.msra.mxu0 %vm1331_vm6, %v1262_v7  ;;  %8658 = vmatprep.mubr.msk.f32.mxu0 %vm1331_vm6, %v436_v11  ;;  %v3339_v52 = vpop.permute.xlu1 %3338 }
 0x365   : > { %8654 = vmatmul.mubr.msk.f32.vlgmr.msra.gmra.mrb[12].mxu1 %vm1331_vm6, %v9387_v12  ;;  %8666 = vmatprep.subr.msk.mxu0 %vm1331_vm6, %v1327_v14 }
 0x366   : > { %8662 = vmatpush3.xpose.msk.msra.mxu1 %vm1331_vm6, %v1303_v8  ;;  %8663 = vmatprep.mubr.msk.f32.mxu1 %vm1331_vm6, %v9399_v23 }
 0x367   : > { %8659 = vmatmul.mubr.msk.f32.vlgmr.msra.gmra.mrb[10].mxu0 %vm1331_vm6, %v9405_v24  ;;  %8671 = vmatprep.subr.msk.mxu1 %vm1331_vm6, %v1310_v17 }
 0x368   : > { %8667 = vmatpush3.xpose.msk.msra.mxu0 %vm1331_vm6, %v1327_v14  ;;  %v3335_v32 = vpop.permute.xlu0 %3334  ;;  %8668 = vmatprep.mubr.msk.f32.mxu0 %vm1331_vm6, %v9414_v25 }
 0x369   : > { %8664 = vmatmul.mubr.msk.f32.vlgmr.msra.gmra.mrb[14].mxu1 %vm1331_vm6, %v9420_v28  ;;  %8676 = vmatprep.subr.msk.mxu0 %vm1331_vm6, %v1328_v29 }
 0x36a   : > { %3413 = vxpose.xlu0.b32.end [2/2] (short) (narrow) %v3335_v32, 8  ;;  %8672 = vmatpush3.xpose.msk.msra.mxu1 %vm1331_vm6, %v1310_v17 }
 0x36b   : > { %8669 = vmatmul.mubr.msk.f32.vlgmr.msra.gmra.mrb[12].mxu0 %vm1331_vm6, %v9433_v33  ;;  %8681 = vmatprep.subr.msk.mxu1 %vm1331_vm6, %v1319_v30 }
 0x36c   : > { %8673 = vmatprep.mubr.msk.f32.mxu1 %vm1331_vm6, %v9443_v35  ;;  %8677 = vmatpush3.xpose.msk.msra.mxu0 %vm1331_vm6, %v1328_v29 }
 0x36d   : > { %8674 = vmatmul.mubr.msk.f32.vlgmr.msra.gmra.mrb[16].mxu1 %vm1331_vm6, %v9449_v36  ;;  %8686 = vmatprep.subr.msk.mxu0 %vm1331_vm6, %v1329_v37 }
 0x36e   : > { %3444 = vxpose.xlu0.b32.start [1/2] (short) (narrow) %v3337_v39, 8  ;;  %8678 = vmatprep.mubr.msk.f32.mxu0 %vm1331_vm6, %v9458_v38 }
 0x36f   : > { %8682 = vmatpush3.xpose.msk.msra.mxu1 %vm1331_vm6, %v1319_v30  ;;  %8679 = vmatmul.mubr.msk.f32.vlgmr.msra.gmra.mrb[14].mxu0 %vm1331_vm6, %v9466_v41 }
 0x370   : > { %8691 = vmatprep.subr.msk.mxu1 %vm1331_vm6, %v1326_v42  ;;  %8683 = vmatprep.mubr.msk.f32.mxu1 %vm1331_vm6, %v9475_v43 }
 0x371   : > { %8687 = vmatpush3.xpose.msk.msra.mxu0 %vm1331_vm6, %v1329_v37  ;;  %8688 = vmatprep.mubr.msk.f32.mxu0 %vm1331_vm6, %v9482_v46 }
 0x372   : > { %8684 = vmatmul.mubr.msk.f32.vlgmr.msra.gmra.mrb[18].mxu1 %vm1331_vm6, %v9490_v47  ;;  %8696 = vmatprep.subr.msk.mxu0 %vm1331_vm6, %v1330_v48 }
 0x373   : > { %3445 = vxpose.xlu0.b32.end [2/2] (short) (narrow) %v3339_v52, 8  ;;  %8692 = vmatpush3.xpose.msk.msra.mxu1 %vm1331_vm6, %v1326_v42 }
 0x374   : > { %8689 = vmatmul.mubr.msk.f32.vlgmr.msra.gmra.mrb[16].mxu0 %vm1331_vm6, %v9500_v50  ;;  %8693 = vmatprep.mubr.msk.f32.mxu1 %vm1331_vm6, %v9507_v51 }
 0x375   : > { %8697 = vmatpush3.xpose.msk.msra.mxu0 %vm1331_vm6, %v1330_v48  ;;  %8698 = vmatprep.mubr.msk.f32.mxu0 %vm1331_vm6, %v9515_v53 }
 0x376   : > { %8694 = vmatmul.mubr.msk.f32.vlgmr.msra.gmra.mrb[20].mxu1 %vm1331_vm6, %v9521_v55 }
 0x377   : > { %8703 = vmatprep.mubr.msk.f32.mxu1 %vm774_vm5, %v9192_v15 }
 0x378   : > { %8699 = vmatmul.mubr.msk.f32.vlgmr.msra.gmra.mrb[18].mxu0 %vm1331_vm6, %v9531_v56 }
 0x379   : > { %8708 = vmatprep.mubr.msk.f32.mxu0 %vm774_vm5, %v9213_v20 }
 0x394   : > { %v3364_v57 = vpop.trf.xlu0 }
 0x395   : > { %8701 = vmatprep.subr.mxu1 %v3364_v57 }
 0x396   : > { %8702 = vmatpush3.msra.mxu1 %v3364_v57 }
 0x397   : > { %8704 = vmatmul.mubr.msk.f32.vlgmr.msra.gmra.mrb[22].mxu1 %vm774_vm5, %v9196_v16 }
 0x398   : > { %8713 = vmatprep.mubr.msk.f32.mxu1 %vm774_vm5, %v9211_v19 }
 0x39b   : > { %v3396_v58 = vpop.trf.xlu1 }
 0x39c   : > { %8706 = vmatprep.subr.mxu0 %v3396_v58 }
 0x39d   : > { %8707 = vmatpush3.msra.mxu0 %v3396_v58 }
 0x39e   : > { %8709 = vmatmul.mubr.msk.f32.vlgmr.msra.gmra.mrb[20].mxu0 %vm774_vm5, %v9218_v22 }
 0x39f   : > { %8718 = vmatprep.mubr.msk.f32.mxu0 %vm774_vm5, %v9216_v21 }
 0x3e6   : > { %v3428_v60 = vpop.trf.xlu0 }
 0x3e7   : > { %8711 = vmatprep.subr.mxu1 %v3428_v60 }
 0x3e8   : > { %8712 = vmatpush3.msra.mxu1 %v3428_v60 }
 0x3e9   : > { %8714 = vmatmul.mubr.msk.f32.vlgmr.msra.gmra.mrb[24].mxu1 %vm774_vm5, %v9224_v27 }
 0x3ea   : > { %8725 = vmatprep.mubr.msk.f32.mxu1 %vm9069_vm4, %v10126_v18 }
 0x3ef   : > { %v3460_v61 = vpop.trf.xlu0 }
 0x3f0   : > { %8716 = vmatprep.subr.mxu0 %v3460_v61 }
 0x3f1   : > { %8717 = vmatpush3.msra.mxu0 %v3460_v61 }
 0x3f2   : > { %8719 = vmatmul.mubr.msk.f32.vlgmr.msra.gmra.mrb[22].mxu0 %vm774_vm5, %v9222_v26 }
 0x3f3   : > { %8732 = vmatprep.mubr.msk.f32.mxu0 %vm9069_vm4, %v10126_v18 }
 0x42c   : > { %v8625_v62 = vpop.f32.mrb[6].mxu1 }
 0x42d   : > { %v1407_v0 = vpop.f32.mrb[7].mxu1 }
 0x42e   : > { %2676 = vxpose.xlu1.b32.start [1/2] (short) (narrow) %v1407_v0, 8  ;;  %v8630_v1 = vpop.f32.mrb[4].mxu0 }
 0x42f   : > { %v1491_v2 = vpop.f32.mrb[5].mxu0 }
 0x430   : > { %2708 = vxpose.xlu0.b32.start [1/2] (short) (narrow) %v1491_v2, 8  ;;  %v8635_v3 = vpop.f32.mrb[8].mxu1 }
 0x431   : > { %v1575_v6 = vpop.f32.mrb[9].mxu1 }
 0x432   : > { %2677 = vxpose.xlu1.b32.end [2/2] (short) (narrow) %v8625_v62, 8  ;;  %v8640_v7 = vpop.f32.mrb[6].mxu0 }
 0x433   : > { %v1659_v8 = vpop.f32.mrb[7].mxu0 }
 0x434   : > { %2709 = vxpose.xlu0.b32.end [2/2] (short) (narrow) %v8630_v1, 8  ;;  %v8645_v11 = vpop.f32.mrb[10].mxu1 }
 0x435   : > { %v1743_v13 = vpop.f32.mrb[11].mxu1 }
 0x436   : > { %2740 = vxpose.xlu1.b32.start [1/2] (short) (narrow) %v1575_v6, 8  ;;  %v8650_v14 = vpop.f32.mrb[8].mxu0 }
 0x437   : > { %v1827_v17 = vpop.f32.mrb[9].mxu0 }
 0x438   : > { %2772 = vxpose.xlu0.b32.start [1/2] (short) (narrow) %v1659_v8, 8  ;;  %v8655_v29 = vpop.f32.mrb[12].mxu1 }
 0x439   : > { %v1911_v30 = vpop.f32.mrb[13].mxu1 }
 0x43a   : > { %2741 = vxpose.xlu1.b32.end [2/2] (short) (narrow) %v8635_v3, 8  ;;  %v8660_v31 = vpop.f32.mrb[10].mxu0 }
 0x43b   : > { %v1995_v32 = vpop.f32.mrb[11].mxu0 }
 0x43c   : > { %2773 = vxpose.xlu0.b32.end [2/2] (short) (narrow) %v8640_v7, 8  ;;  %v8665_v37 = vpop.f32.mrb[14].mxu1 }
 0x43d   : > { %v2079_v39 = vpop.f32.mrb[15].mxu1 }
 0x43e   : > { %2804 = vxpose.xlu1.b32.start [1/2] (short) (narrow) %v1743_v13, 8  ;;  %v8670_v42 = vpop.f32.mrb[12].mxu0 }
 0x43f   : > { %v2163_v48 = vpop.f32.mrb[13].mxu0 }
 0x440   : > { %2836 = vxpose.xlu0.b32.start [1/2] (short) (narrow) %v1827_v17, 8  ;;  %v8675_v52 = vpop.f32.mrb[16].mxu1 }
 0x441   : > { %v2247_v57 = vpop.f32.mrb[17].mxu1 }
 0x442   : > { %2805 = vxpose.xlu1.b32.end [2/2] (short) (narrow) %v8645_v11, 8  ;;  %v8680_v58 = vpop.f32.mrb[14].mxu0 }
 0x443   : > { %v2331_v60 = vpop.f32.mrb[15].mxu0 }
 0x444   : > { %2837 = vxpose.xlu0.b32.end [2/2] (short) (narrow) %v8650_v14, 8 }
 0x445   : > { %v8685_v61 = vpop.f32.mrb[18].mxu1 }
 0x446   : > { %2868 = vxpose.xlu1.b32.start [1/2] (short) (narrow) %v1911_v30, 8  ;;  %v2415_v62 = vpop.f32.mrb[19].mxu1 }
 0x447   : > { %v8690_v0 = vpop.f32.mrb[16].mxu0 }
 0x448   : > { %2900 = vxpose.xlu0.b32.start [1/2] (short) (narrow) %v1995_v32, 8  ;;  %v2499_v1 = vpop.f32.mrb[17].mxu0 }
 0x449   : > { %v8695_v2 = vpop.f32.mrb[20].mxu1 }
 0x44a   : > { %2869 = vxpose.xlu1.b32.end [2/2] (short) (narrow) %v8655_v29, 8  ;;  %v2583_v3 = vpop.f32.mrb[21].mxu1 }
 0x44b   : > { %v8700_v6 = vpop.f32.mrb[18].mxu0 }
 0x44c   : > { %2901 = vxpose.xlu0.b32.end [2/2] (short) (narrow) %v8660_v31, 8  ;;  %v2667_v7 = vpop.f32.mrb[19].mxu0 }
 0x44e   : > { %2932 = vxpose.xlu1.b32.start [1/2] (short) (narrow) %v2079_v39, 8 }
 0x450   : > { %2964 = vxpose.xlu0.b32.start [1/2] (short) (narrow) %v2163_v48, 8 }
 0x452   : > { %2933 = vxpose.xlu1.b32.end [2/2] (short) (narrow) %v8665_v37, 8 }
 0x454   : > { %2965 = vxpose.xlu0.b32.end [2/2] (short) (narrow) %v8670_v42, 8 }
 0x456   : > { %2996 = vxpose.xlu1.b32.start [1/2] (short) (narrow) %v2247_v57, 8 }
 0x458   : > { %3028 = vxpose.xlu0.b32.start [1/2] (short) (narrow) %v2331_v60, 8 }
 0x45a   : > { %2997 = vxpose.xlu1.b32.end [2/2] (short) (narrow) %v8675_v52, 8 }
 0x45c   : > { %3029 = vxpose.xlu0.b32.end [2/2] (short) (narrow) %v8680_v58, 8 }
 0x45e   : > { %3060 = vxpose.xlu1.b32.start [1/2] (short) (narrow) %v2415_v62, 8 }
 0x460   : > { %3092 = vxpose.xlu0.b32.start [1/2] (short) (narrow) %v2499_v1, 8 }
 0x462   : > { %3061 = vxpose.xlu1.b32.end [2/2] (short) (narrow) %v8685_v61, 8 }
 0x464   : > { %3093 = vxpose.xlu0.b32.end [2/2] (short) (narrow) %v8690_v0, 8 }
 0x466   : > { %3124 = vxpose.xlu1.b32.start [1/2] (short) (narrow) %v2583_v3, 8 }
 0x468   : > { %3156 = vxpose.xlu0.b32.start [1/2] (short) (narrow) %v2667_v7, 8 }
 0x46a   : > { %v9559_v8 = vpop.f32.mrb[22].mxu1  ;;  %3125 = vxpose.xlu1.b32.end [2/2] (short) (narrow) %v8695_v2, 8 }
 0x46b   : > { %v3546_v11 = vpop.f32.mrb[23].mxu1 }
 0x46c   : > { %3157 = vxpose.xlu0.b32.end [2/2] (short) (narrow) %v8700_v6, 8 }
 0x471   : > { %v9561_v13 = vpop.f32.mrb[20].mxu0 }
 0x472   : > { %v3625_v14 = vpop.f32.mrb[21].mxu0 }
 0x4ae   : > { %v2692_v17 = vpop.trf.xlu1 }
 0x4b0   : > { %v2724_v29 = vpop.trf.xlu0 }
 0x4b6   : > { %v2756_v31 = vpop.trf.xlu1 }
 0x4b7   : > { %v3188_v48 = vcombine.low %v2692_v17, %v2756_v31 }
 0x4b8   : > { %v2788_v37 = vpop.trf.xlu0 }
 0x4b9   : > { %v3196_v52 = vcombine.low %v2724_v29, %v2788_v37  ;;  %v3195_v61 = vrot.slane %v3188_v48, %v9229_v34 }
 0x4bb   : > { %v3203_v62 = vrot.slane %v3196_v52, %v9229_v34 }
 0x4bc   : > { %v9563_v30 = vpop.f32.mrb[24].mxu1 }
 0x4bd   : > { %v3704_v32 = vpop.f32.mrb[25].mxu1  ;;  %v3220_v3 = vcombine.low %v3195_v61, %v3203_v62  ;;  %v3221_v6 = vcombine.high %v3195_v61, %v3203_v62 }
 0x4be   : > { %v2820_v39 = vpop.trf.xlu1 }
 0x4bf   : > { %v3228_v29 = vrot.slane %v3220_v3, %v9232_v40  ;;  %v3235_v31 = vrot.slane %v3221_v6, %v9232_v40 }
 0x4c0   : > { %v2852_v42 = vpop.trf.xlu0 }
 0x4c5   : > { %v9565_v57 = vpop.f32.mrb[22].mxu0 }
 0x4c6   : > { %v3783_v58 = vpop.f32.mrb[23].mxu0  ;;  %v2884_v60 = vpop.trf.xlu1 }
 0x4c7   : > { %v3204_v0 = vcombine.low %v2820_v39, %v2884_v60  ;;  %v9578_v39 = vld [vmem:[%s10115_s1] sm:$0xff] }
 0x4c8   : > { %v2916_v1 = vpop.trf.xlu0  ;;  %vm3800_vm7 = vcmp.gt.f32.partialorder %v9578_v39, 0.0 }
 0x4c9   : > { %v3212_v2 = vcombine.low %v2852_v42, %v2916_v1  ;;  %v3211_v7 = vrot.slane %v3204_v0, %v9229_v34 }
 0x4cb   : > { %v3219_v18 = vrot.slane %v3212_v2, %v9229_v34 }
 0x4cd   : > { %v3236_v45 = vcombine.low %v3211_v7, %v3219_v18  ;;  %v3237_v17 = vcombine.high %v3211_v7, %v3219_v18 }
 0x4ce   : > { %v2948_v18 = vpop.trf.xlu1 }
 0x4cf   : > { %v3244_v37 = vrot.slane %v3236_v45, %v9232_v40  ;;  %v3251_v48 = vrot.slane %v3237_v17, %v9232_v40 }
 0x4d0   : > { %v2980_v3 = vpop.trf.xlu0 }
 0x4d1   : > { %v3252_v42 = vcombine.low %v3228_v29, %v3244_v37  ;;  %v3253_v52 = vcombine.high %v3228_v29, %v3244_v37  ;;  %v3254_v60 = vcombine.low %v3235_v31, %v3251_v48  ;;  %v3255_v45 = vcombine.high %v3235_v31, %v3251_v48 }
 0x4d3   : > { %v3547_v61 = vadd.f32 %v3546_v11, %v3252_v42  ;;  %v3626_v62 = vadd.f32 %v3625_v14, %v3253_v52  ;;  %v3705_v2 = vadd.f32 %v3704_v32, %v3254_v60  ;;  %v3784_v17 = vadd.f32 %v3783_v58, %v3255_v45 }
 0x4d5   : > { %v3792_v0 = vmul.f32 0.35355338, %v3547_v61  ;;  %v3794_v1 = vmul.f32 0.35355338, %v3626_v62  ;;  %v3796_v14 = vmul.f32 0.35355338, %v3705_v2 }
 0x4d6   : > { %v3012_v29 = vpop.trf.xlu1  ;;  %v3798_v48 = vmul.f32 0.35355338, %v3784_v17 }
 0x4d7   : > { %v9583_v6 = vsel %vm3800_vm7, %v3792_v0, -3e+38  ;;  %v9589_v11 = vsel %vm3800_vm7, %v3794_v1, -3e+38  ;;  %v9595_v37 = vsel %vm3800_vm7, %v3796_v14, -3e+38  ;;  %v3256_v60 = vcombine.low %v2948_v18, %v3012_v29 }
 0x4d8   : > { %v3815_v7 = vsel %vm3814_vm8, %v9583_v6, -inf  ;;  %v3821_v32 = vsel %vm3814_vm8, %v9589_v11, -inf  ;;  %v3044_v31 = vpop.trf.xlu0  ;;  %v3827_v42 = vsel %vm3814_vm8, %v9595_v37, -inf  ;;  %v9601_v58 = vsel %vm3800_vm7, %v3798_v48, -3e+38 }
 0x4d9   : > { %3816 = vmax.xlane.f32.xlu1 %v3815_v7  ;;  %v3264_v61 = vcombine.low %v2980_v3, %v3044_v31  ;;  %v3833_v0 = vsel %vm3814_vm8, %v9601_v58, -inf  ;;  %v3263_v1 = vrot.slane %v3256_v60, %v9229_v34 }
 0x4db   : > { %v3271_v2 = vrot.slane %v3264_v61, %v9229_v34 }
 0x4dd   : > { %3822 = vmax.xlane.f32.xlu1 %v3821_v32  ;;  %v3288_v17 = vcombine.low %v3263_v1, %v3271_v2  ;;  %v3289_v18 = vcombine.high %v3263_v1, %v3271_v2 }
 0x4de   : > { %v3076_v52 = vpop.trf.xlu1 }
 0x4df   : > { %v3296_v31 = vrot.slane %v3288_v17, %v9232_v40  ;;  %v3303_v48 = vrot.slane %v3289_v18, %v9232_v40 }
 0x4e0   : > { %v3108_v62 = vpop.trf.xlu0 }
 0x4e1   : > { %3828 = vmax.xlane.f32.xlu1 %v3827_v42 }
 0x4e5   : > { %3834 = vmax.xlane.f32.xlu1 %v3833_v0 }
 0x4e6   : > { %v3140_v45 = vpop.trf.xlu1 }
 0x4e7   : > { %v3272_v7 = vcombine.low %v3076_v52, %v3140_v45  ;;  %v9616_v52 = vld [vmem:[%s10115_s1 + $0x8] sm:$0xff] }
 0x4e8   : > { %v3172_v14 = vpop.trf.xlu0  ;;  %vm3801_vm9 = vcmp.gt.f32.partialorder %v9616_v52, 0.0 }
 0x4e9   : > { %v3279_v3 = vrot.slane %v3272_v7, %v9229_v34  ;;  %v3280_v29 = vcombine.low %v3108_v62, %v3172_v14 }
 0x4eb   : > { %v3287_v32 = vrot.slane %v3280_v29, %v9229_v34 }
 0x4ed   : > { %v3304_v42 = vcombine.low %v3279_v3, %v3287_v32  ;;  %v3305_v56 = vcombine.high %v3279_v3, %v3287_v32 }
 0x4ef   : > { %v3312_v60 = vrot.slane %v3304_v42, %v9232_v40  ;;  %v3319_v61 = vrot.slane %v3305_v56, %v9232_v40 }
 0x4f1   : > { %v3321_v0 = vcombine.high %v3296_v31, %v3312_v60  ;;  %v3320_v1 = vcombine.low %v3296_v31, %v3312_v60  ;;  %v3322_v62 = vcombine.low %v3303_v48, %v3319_v61  ;;  %v3323_v2 = vcombine.high %v3303_v48, %v3319_v61 }
 0x4f3   : > { %v3631_v45 = vadd.f32 %v9561_v13, %v3321_v0  ;;  %v3552_v7 = vadd.f32 %v9559_v8, %v3320_v1  ;;  %v3710_v14 = vadd.f32 %v9563_v30, %v3322_v62  ;;  %v3789_v3 = vadd.f32 %v9565_v57, %v3323_v2 }
 0x4f5   : > { %v3795_v17 = vmul.f32 0.35355338, %v3631_v45  ;;  %v3793_v18 = vmul.f32 0.35355338, %v3552_v7  ;;  %v3797_v56 = vmul.f32 0.35355338, %v3710_v14 }
 0x4f6   : > { %v3799_v30 = vmul.f32 0.35355338, %v3789_v3 }
 0x4f7   : > { %v3809_v29 = vsel %vm3801_vm9, %v3795_v17, -3e+38  ;;  %v3807_v32 = vsel %vm3801_vm9, %v3793_v18, -3e+38  ;;  %v9631_v8 = vsel %vm3801_vm9, %v3797_v56, -3e+38 }
 0x4f8   : > { %v3824_v31 = vsel %vm3814_vm8, %v3809_v29, -inf  ;;  %v3818_v13 = vsel %vm3814_vm8, %v3807_v32, -inf  ;;  %v3830_v57 = vsel %vm3814_vm8, %v9631_v8, -inf  ;;  %v3813_v48 = vsel %vm3801_vm9, %v3799_v30, -3e+38 }
 0x4f9   : > { %3825 = vmax.xlane.f32.xlu1 %v3824_v31  ;;  %3819 = vmax.xlane.f32.xlu0 %v3818_v13  ;;  %v3836_v42 = vsel %vm3814_vm8, %v3813_v48, -inf }
 0x4fd   : > { %3831 = vmax.xlane.f32.xlu0 %v3830_v57 }
 0x501   : > { %3837 = vmax.xlane.f32.xlu0 %v3836_v42 }
 0x50a   : > { %3919 = vrot.lane.b32.xlu1 %v9192_v15, %s9073_s23 }
 0x50e   : > { %3921 = vrot.lane.b32.xlu1 %v9196_v16, %s9073_s23 }
 0x512   : > { %3925 = vrot.lane.b32.xlu1 %v9218_v22, %s9073_s23 }
 0x516   : > { %3927 = vrot.lane.b32.xlu1 %v9211_v19, %s9073_s23 }
 0x517   : > { %3923 = vrot.lane.b32.xlu0 %v9213_v20, %s9073_s23 }
 0x51a   : > { %3929 = vrot.lane.b32.xlu1 %v9224_v27, %s9073_s23 }
 0x51b   : > { %3931 = vrot.lane.b32.xlu0 %v9216_v21, %s9073_s23 }
 0x566   : > { %v3817_v60 = vpop.xlane.xlu1 %3816 }
 0x567   : > { %v3839_v61 = vsub.f32 %v9583_v6, %v3817_v60 }
 0x569   : > { %v3847_v0 = vmul.f32 1.442695, %v3839_v61 }
 0x56a   : > { %v3823_v1 = vpop.xlane.xlu1 %3822 }
 0x56b   : > { %9018 = vpow2.f32 %v3847_v0  ;;  %v3841_v22 = vsub.f32 %v9589_v11, %v3823_v1 }
 0x56d   : > { %v3851_v62 = vmul.f32 1.442695, %v3841_v22 }
 0x56e   : > { %v3829_v2 = vpop.xlane.xlu1 %3828 }
 0x56f   : > { %9020 = vpow2.f32 %v3851_v62  ;;  %v3843_v19 = vsub.f32 %v9595_v37, %v3829_v2 }
 0x571   : > { %v3855_v20 = vmul.f32 1.442695, %v3843_v19 }
 0x572   : > { %v3835_v45 = vpop.xlane.xlu1 %3834 }
 0x573   : > { %9022 = vpow2.f32 %v3855_v20  ;;  %v3845_v27 = vsub.f32 %v9601_v58, %v3835_v45 }
 0x575   : > { %v9019_v7 = vpop.eup %9018  ;;  %v3859_v21 = vmul.f32 1.442695, %v3845_v27 }
 0x576   : > { %v9658_v6 = vsel %vm3800_vm7, %v9019_v7, 0.0 }
 0x577   : > { %9024 = vpow2.f32 %v3859_v21  ;;  %v3871_v11 = vsel %vm3814_vm8, %v9658_v6, 0.0 }
 0x578   : > { %3872 = vadd.xlane.f32.xlu1 %v3871_v11 }
 0x579   : > { %v9021_v14 = vpop.eup %9020 }
 0x57a   : > { %v9664_v37 = vsel %vm3800_vm7, %v9021_v14, 0.0 }
 0x57b   : > { %v3877_v17 = vsel %vm3814_vm8, %v9664_v37, 0.0 }
 0x57c   : > { %3878 = vadd.xlane.f32.xlu1 %v3877_v17  ;;  %v9074_v17 = vmov 0.0|0.0  }
 0x57d   : > { %v9023_v58 = vpop.eup %9022  ;;  %8911 = vmatprep.subr.bf16.mxu1 %v9074_v17  ;;  %8915 = vmatprep.subr.bf16.mxu0 %v9074_v17 }
 0x57e   : > { %v9670_v18 = vsel %vm3800_vm7, %v9023_v58, 0.0 }
 0x57f   : > { %v3883_v56 = vsel %vm3814_vm8, %v9670_v18, 0.0 }
 0x580   : > { %3884 = vadd.xlane.f32.xlu0 %v3883_v56 }
 0x581   : > { %v9025_v3 = vpop.eup %9024 }
 0x582   : > { %v9676_v31 = vsel %vm3800_vm7, %v9025_v3, 0.0 }
 0x583   : > { %v3889_v13 = vsel %vm3814_vm8, %v9676_v31, 0.0 }
 0x584   : > { %3890 = vadd.xlane.f32.xlu0 %v3889_v13 }
 0x586   : > { %v3826_v30 = vpop.xlane.xlu1 %3825  ;;  %v3820_v57 = vpop.xlane.xlu0 %3819 }
 0x587   : > { %v3842_v42 = vsub.f32 %v3809_v29, %v3826_v30  ;;  %v3840_v60 = vsub.f32 %v3807_v32, %v3820_v57 }
 0x589   : > { %v3853_v61 = vmul.f32 1.442695, %v3842_v42  ;;  %v3849_v0 = vmul.f32 1.442695, %v3840_v60 }
 0x58a   : > { %v3832_v1 = vpop.xlane.xlu0 %3831  ;;  %v3920_v58 = vpop.permute.xlu1 %3919 }
 0x58b   : > { %9026 = vpow2.f32 %v3853_v61  ;;  %v3844_v29 = vsub.f32 %v9631_v8, %v3832_v1 }
 0x58c   : > { %9028 = vpow2.f32 %v3849_v0  ;;  %v10133_v0 = vmov 0.0  }
 0x58d   : > { %3933 = vrot.lane.b32.xlu1 %v9222_v26, %s9073_s23  ;;  %v3857_v27 = vmul.f32 1.442695, %v3844_v29  ;;  %v610_v1 = vcombine.high %v9236_v44, %v10133_v0  ;;  %s9078_s23 = smov 8  }
 0x58e   : > { %v3838_v22 = vpop.xlane.xlu0 %3837  ;;  %v3922_v56 = vpop.permute.xlu1 %3921 }
 0x58f   : > { %v3846_v39 = vsub.f32 %v3813_v48, %v3838_v22 }
 0x591   : > { %v3861_v62 = vmul.f32 1.442695, %v3846_v39 }
 0x592   : > { %v3926_v3 = vpop.permute.xlu1 %3925  ;;  %v3924_v30 = vpop.permute.xlu0 %3923 }
 0x593   : > { %9030 = vpow2.f32 %v3861_v62 }
 0x594   : > { %9032 = vpow2.f32 %v3857_v27 }
 0x595   : > { %v9027_v2 = vpop.eup %9026 }
 0x596   : > { %v9029_v19 = vpop.eup %9028  ;;  %v3866_v45 = vsel %vm3801_vm9, %v9027_v2, 0.0  ;;  %v3928_v13 = vpop.permute.xlu1 %3927 }
 0x597   : > { %v3864_v20 = vsel %vm3801_vm9, %v9029_v19, 0.0  ;;  %v3880_v26 = vsel %vm3814_vm8, %v3866_v45, 0.0  ;;  %v3932_v57 = vpop.permute.xlu0 %3931 }
 0x598   : > { %v3874_v32 = vsel %vm3814_vm8, %v3864_v20, 0.0 }
 0x599   : > { %3875 = vadd.xlane.f32.xlu0 %v3874_v32 }
 0x59a   : > { %v3930_v52 = vpop.permute.xlu1 %3929 }
 0x59d   : > { %v9031_v7 = vpop.eup %9030  ;;  %3881 = vadd.xlane.f32.xlu0 %v3880_v26 }
 0x59e   : > { %v9691_v48 = vsel %vm3801_vm9, %v9031_v7, 0.0  ;;  %v9033_v8 = vpop.eup %9032 }
 0x59f   : > { %v3892_v21 = vsel %vm3814_vm8, %v9691_v48, 0.0  ;;  %v9697_v11 = vsel %vm3801_vm9, %v9033_v8, 0.0 }
 0x5a0   : > { %v3886_v14 = vsel %vm3814_vm8, %v9697_v11, 0.0 }
 0x5a1   : > { %3893 = vadd.xlane.f32.xlu0 %v3892_v21 }
 0x5b1   : > { %3887 = vadd.xlane.f32.xlu1 %v3886_v14 }
 0x5ce   : > { %3943 = vxpose.xlu0.b32.start [1/2] (short) (narrow) %v3920_v58, 8 }
 0x5d2   : > { %3944 = vxpose.xlu0.b32.end [2/2] (short) (narrow) %v3922_v56, 8 }
 0x5d6   : > { %4007 = vxpose.xlu0.b32.start [1/2] (short) (narrow) %v3928_v13, 8 }
 0x5da   : > { %4008 = vxpose.xlu0.b32.end [2/2] (short) (narrow) %v3930_v52, 8 }
 0x5de   : > { %4039 = vxpose.xlu0.b32.start [1/2] (short) (narrow) %v3932_v57, 8 }
 0x5e4   : > { %3975 = vxpose.xlu1.b32.start [1/2] (short) (narrow) %v3924_v30, 8 }
 0x5e8   : > { %3976 = vxpose.xlu1.b32.end [2/2] (short) (narrow) %v3926_v3, 8 }
 0x5ec   : > { %5955 = vxpose.xlu1.b32.start.end [1/1] (short) (narrow) %v9236_v44, 8 }
 0x605   : > { %v3873_v42 = vpop.xlane.xlu1 %3872 }
 0x606   : > { %v3895_v62 = vadd.f32 1e-16, %v3873_v42 }
 0x608   : > { %9034 = vrcp.f32 %v3895_v62 }
 0x609   : > { %v3879_v60 = vpop.xlane.xlu1 %3878 }
 0x60a   : > { %v3897_v19 = vadd.f32 1e-16, %v3879_v60 }
 0x60d   : > { %v3934_v61 = vpop.permute.xlu1 %3933  ;;  %v3885_v22 = vpop.xlane.xlu0 %3884 }
 0x60e   : > { %4040 = vxpose.xlu0.b32.end [2/2] (short) (narrow) %v3934_v61, 8 }
 0x611   : > { %v3891_v39 = vpop.xlane.xlu0 %3890 }
 0x612   : > { %5987 = vxpose.xlu0.b32.start.end [1/1] (short) (narrow) %v610_v1, 8  ;;  %v9035_v26 = vpop.eup %9034  ;;  %v3901_v13 = vadd.f32 1e-16, %v3891_v39 }
 0x613   : > { %v3911_v21 = vmul.f32 %v9035_v26, %v9658_v6  ;;  %v3899_v6 = vadd.f32 1e-16, %v3885_v22 }
 0x626   : > { %v3876_v2 = vpop.xlane.xlu0 %3875 }
 0x627   : > { %v3896_v29 = vadd.f32 1e-16, %v3876_v2 }
 0x629   : > { %9036 = vrcp.f32 %v3896_v29 }
 0x62a   : > { %v3882_v32 = vpop.xlane.xlu0 %3881  ;;  %9038 = vrcp.f32 %v3897_v19 }
 0x62b   : > { %v3898_v27 = vadd.f32 1e-16, %v3882_v32 }
 0x62d   : > { %9040 = vrcp.f32 %v3898_v27 }
 0x62e   : > { %9042 = vrcp.f32 %v3901_v13  ;;  %v3894_v57 = vpop.xlane.xlu0 %3893 }
 0x62f   : > { %9044 = vrcp.f32 %v3899_v6  ;;  %v3902_v61 = vadd.f32 1e-16, %v3894_v57 }
 0x633   : > { %v9037_v7 = vpop.eup %9036 }
 0x634   : > { %v9707_v8 = vmul.f32 %v9037_v7, %v3864_v20  ;;  %v9039_v44 = vpop.eup %9038 }
 0x635   : > { %v3913_v3 = vmul.f32 %v9039_v44, %v9664_v37 }
 0x636   : > { %v8912_v58 = vpack.c.bf16 %v9707_v8, %v3911_v21 }
 0x637   : > { %v9041_v56 = vpop.eup %9040 }
 0x638   : > { %v9717_v30 = vmul.f32 %v9041_v56, %v3866_v45  ;;  %8914 = vmatpush3.bf16.xpose.msk.msra.mxu1 %vm9711_vm10, %v8912_v58  ;;  %v9043_v45 = vpop.eup %9042  ;;  %v8934_v58 = vpack.c.bf16 %v9327_v59, %v9311_v54  ;;  %v8940_v54 = vpack.c.bf16 %v9357_v5, %v9338_v63  ;;  %v8946_v63 = vpack.c.bf16 %v9387_v12, %v9368_v9 }
 0x639   : > { %8919 = vmatprep.subr.bf16.mxu1 %v9074_v17  ;;  %v9045_v42 = vpop.eup %9044  ;;  %v3917_v60 = vmul.f32 %v9043_v45, %v9676_v31  ;;  %v8952_v9 = vpack.c.bf16 %v9420_v28, %v9399_v23  ;;  %v8958_v28 = vpack.c.bf16 %v9449_v36, %v9443_v35 }
 0x63a   : > { %v8916_v20 = vpack.c.bf16 %v9717_v30, %v3913_v3  ;;  %v3915_v22 = vmul.f32 %v9045_v42, %v9670_v18 }
 0x63b   : > { %v4667_v62 = vcombine.low %v3913_v3, %v3917_v60  ;;  %v4668_v32 = vcombine.high %v3913_v3, %v3917_v60 }
 0x63c   : > { %8918 = vmatpush3.bf16.xpose.msk.msra.mxu0 %vm9711_vm10, %v8916_v20  ;;  %v4651_v29 = vcombine.low %v3911_v21, %v3915_v22  ;;  %v4652_v7 = vcombine.high %v3911_v21, %v3915_v22 }
 0x63d   : > { %8923 = vmatprep.subr.bf16.mxu0 %v9074_v17  ;;  %v4675_v18 = vrot.slane %v4667_v62, %v9229_v34 }
 0x63e   : > { %v3888_v52 = vpop.xlane.xlu1 %3887  ;;  %v4659_v31 = vrot.slane %v4651_v29, %v9229_v34  ;;  %v4666_v3 = vrot.slane %v4652_v7, %v9229_v34  ;;  %v9053_v29 = vld [vmem:[%s10116_s2 + $0x38] sm:$0xff] }
 0x63f   : > { %v3900_v37 = vadd.f32 1e-16, %v3888_v52 }
 0x640   : > { %v4683_v27 = vcombine.low %v4659_v31, %v4675_v18 }
 0x641   : > { %9046 = vrcp.f32 %v3900_v37 }
 0x642   : > { %9048 = vrcp.f32 %v3902_v61  ;;  %v9748_v56 = vrot.slane %v4683_v27, %v9232_v40 }
 0x64b   : > { %v9047_v1 = vpop.eup %9046 }
 0x64c   : > { %v9729_v39 = vmul.f32 %v9047_v1, %v9697_v11  ;;  %v8928_v11 = vpack.c.bf16 %v9300_v49, %v9274_v4  ;;  %v9049_v44 = vpop.eup %9048  ;;  %v4684_v4 = vcombine.high %v4659_v31, %v4675_v18  ;;  %v4682_v49 = vrot.slane %v4668_v32, %v9229_v34 }
 0x64d   : > { %v3918_v21 = vmul.f32 %v9049_v44, %v9691_v48  ;;  %v8964_v1 = vpack.c.bf16 %v9490_v47, %v9475_v43  ;;  %v4715_v31 = vcombine.high %v9748_v56, %v10133_v0  ;;  %v8955_v44 = vpack.c.bf16 %v9433_v33, %v9414_v25 }
 0x64e   : > { %v3959_v2 = vpop.trf.xlu0  ;;  %v8920_v19 = vpack.c.bf16 %v9729_v39, %v3915_v22  ;;  %v4719_v59 = vcombine.low %v9707_v8, %v9729_v39  ;;  %v9763_v13 = vrot.slane %v4684_v4, %v9232_v40  ;;  %v4699_v48 = vcombine.low %v4666_v3, %v4682_v49 }
 0x64f   : > { %8726 = vmatmul.mubr.msk.f32.vlgmr.msra.gmra.mrb[26].mxu1 %vm3814_vm8, %v3959_v2  ;;  %v4735_v6 = vcombine.low %v9717_v30, %v3918_v21  ;;  %v4700_v20 = vcombine.high %v4666_v3, %v4682_v49  ;;  %v8924_v45 = vpack.c.bf16 %v3918_v21, %v3917_v60  ;;  %v4720_v57 = vcombine.high %v9707_v8, %v9729_v39 }
 0x650   : > { %8922 = vmatpush3.bf16.xpose.msk.msra.mxu1 %vm9711_vm10, %v8920_v19  ;;  %8739 = vmatprep.mubr.msk.f32.mxu1 %vm9069_vm4, %v10133_v0  ;;  %v9774_v5 = vrot.slane %v4699_v48, %v9232_v40  ;;  %v4727_v52 = vrot.slane %v4719_v59, %v9229_v34  ;;  %v4736_v23 = vcombine.high %v9717_v30, %v3918_v21  ;;  %v9052_v19 = vld [vmem:[%s10116_s2 + $0x30] sm:$0xff] }
 0x651   : > { %8927 = vmatprep.subr.bf16.mxu1 %v9074_v17  ;;  %v4743_v37 = vrot.slane %v4735_v6, %v9229_v34  ;;  %v9789_v42 = vrot.slane %v4700_v20, %v9232_v40  ;;  %v4734_v60 = vrot.slane %v4720_v57, %v9229_v34  ;;  %v8970_v22 = vpack.c.bf16 %v9521_v55, %v9507_v51  ;;  %v9050_v51 = vld [vmem:[%s10116_s2 + $0x10] sm:$0xff]  ;;  %v9051_v55 = vld [vmem:[%s10116_s2 + $0x18] sm:$0xff] }
 0x652   : > { %v4750_v30 = vrot.slane %v4736_v23, %v9229_v34  ;;  %v8931_v62 = vpack.c.bf16 %v9051_v55, %v9050_v51  ;;  %v8937_v18 = vpack.c.bf16 %v9053_v29, %v9052_v19  ;;  %v4716_v27 = vcombine.high %v9763_v13, %v10133_v0  ;;  %v10137_v23 = vld [vmem:[#allocation5_spill] sm:$0xff] }
 0x653   : > { %v4751_v61 = vcombine.low %v4727_v52, %v4743_v37  ;;  %v4752_v14 = vcombine.high %v4727_v52, %v4743_v37  ;;  %v8967_v33 = vpack.c.bf16 %v9500_v50, %v9482_v46 }
 0x654   : > { %v4767_v36 = vcombine.low %v4734_v60, %v4750_v30  ;;  %v4768_v47 = vcombine.high %v4734_v60, %v4750_v30 }
 0x655   : > { %v4759_v8 = vrot.slane %v4751_v61, %v9232_v40  ;;  %v4766_v35 = vrot.slane %v4752_v14, %v9232_v40 }
 0x656   : > { %v4023_v26 = vpop.trf.xlu0  ;;  %v4775_v43 = vrot.slane %v4767_v36, %v9232_v40  ;;  %v4782_v39 = vrot.slane %v4768_v47, %v9232_v40 }
 0x657   : > { %8740 = vmatmul.mubr.msk.f32.vlgmr.msra.gmra.mrb[28].mxu1 %vm3814_vm8, %v4023_v26  ;;  %v9055_v26 = vld [vmem:[%s10116_s2 + $0x70] sm:$0xff]  ;;  %v4783_v25 = vcombine.high %v4759_v8, %v10133_v0 }
 0x658   : > { %8929 = vmatpush3.bf16.msra.mxu1 %v8928_v11  ;;  %8753 = vmatprep.mubr.msk.f32.mxu1 %vm9069_vm4, %v10133_v0  ;;  %v9054_v11 = vld [vmem:[%s10116_s2 + $0x50] sm:$0xff]  ;;  %v8949_v7 = vpack.c.bf16 %v9405_v24, %v9055_v26  ;;  %v4718_v24 = vcombine.high %v9789_v42, %v10133_v0  ;;  %v4785_v4 = vcombine.high %v4775_v43, %v10133_v0 }
 0x659   : > { %8933 = vmatprep.subr.bf16.mxu1 %v9074_v17  ;;  %v8943_v32 = vpack.c.bf16 %v9374_v10, %v9054_v11  ;;  %v4717_v10 = vcombine.high %v9774_v5, %v10133_v0  ;;  %v4786_v46 = vcombine.high %v4782_v39, %v10133_v0 }
 0x65b   : > { %8754 = vmatmul.mubr.msk.f32.vlgmr.msra.gmra.mrb[30].mxu1 %vm3814_vm8, %v9748_v56  ;;  %v4784_v56 = vcombine.high %v4766_v35, %v10133_v0 }
 0x65c   : > { %8935 = vmatpush3.bf16.msra.mxu1 %v8934_v58  ;;  %8767 = vmatprep.mubr.msk.f32.mxu1 %vm9069_vm4, %v10133_v0  ;;  %v8961_v58 = vpack.c.bf16 %v9466_v41, %v9458_v38  ;;  %v10136_v38 = vld [vmem:[#allocation6_spill] sm:$0xff] }
 0x65d   : > { %8939 = vmatprep.subr.bf16.mxu1 %v9074_v17  ;;  %v8973_v41 = vpack.c.bf16 %v10136_v38, %v9515_v53 }
 0x65f   : > { %8768 = vmatmul.mubr.msk.f32.vlgmr.msra.gmra.mrb[32].mxu1 %vm3814_vm8, %v9763_v13 }
 0x660   : > { %8941 = vmatpush3.bf16.msra.mxu1 %v8940_v54  ;;  %8781 = vmatprep.mubr.msk.f32.mxu1 %vm9069_vm4, %v10133_v0 }
 0x661   : > { %8945 = vmatprep.subr.bf16.mxu1 %v9074_v17 }
 0x663   : > { %8782 = vmatmul.mubr.msk.f32.vlgmr.msra.gmra.mrb[34].mxu1 %vm3814_vm8, %v9774_v5 }
 0x664   : > { %v3991_v12 = vpop.trf.xlu1  ;;  %8947 = vmatpush3.bf16.msra.mxu1 %v8946_v63  ;;  %8795 = vmatprep.mubr.msk.f32.mxu1 %vm9069_vm4, %v10133_v0 }
 0x665   : > { %8733 = vmatmul.mubr.msk.f32.vlgmr.msra.gmra.mrb[24].mxu0 %vm3814_vm8, %v3991_v12  ;;  %8951 = vmatprep.subr.bf16.mxu1 %v9074_v17 }
 0x666   : > { %8926 = vmatpush3.bf16.xpose.msk.msra.mxu0 %vm9711_vm10, %v8924_v45  ;;  %8746 = vmatprep.mubr.msk.f32.mxu0 %vm9069_vm4, %v10133_v0 }
 0x667   : > { %8796 = vmatmul.mubr.msk.f32.vlgmr.msra.gmra.mrb[36].mxu1 %vm3814_vm8, %v9789_v42  ;;  %8930 = vmatprep.subr.bf16.mxu0 %v9074_v17 }
 0x668   : > { %8953 = vmatpush3.bf16.msra.mxu1 %v8952_v9  ;;  %8809 = vmatprep.mubr.msk.f32.mxu1 %vm9069_vm4, %v10133_v0 }
 0x669   : > { %8957 = vmatprep.subr.bf16.mxu1 %v9074_v17 }
 0x66b   : > { %8810 = vmatmul.mubr.msk.f32.vlgmr.msra.gmra.mrb[38].mxu1 %vm3814_vm8, %v4759_v8 }
 0x66c   : > { %8959 = vmatpush3.bf16.msra.mxu1 %v8958_v28  ;;  %8823 = vmatprep.mubr.msk.f32.mxu1 %vm9069_vm4, %v10133_v0 }
 0x66d   : > { %8963 = vmatprep.subr.bf16.mxu1 %v9074_v17 }
 0x66f   : > { %8824 = vmatmul.mubr.msk.f32.vlgmr.msra.gmra.mrb[40].mxu1 %vm3814_vm8, %v4766_v35 }
 0x670   : > { %8965 = vmatpush3.bf16.msra.mxu1 %v8964_v1  ;;  %8837 = vmatprep.mubr.msk.f32.mxu1 %vm9069_vm4, %v10133_v0 }
 0x671   : > { %8969 = vmatprep.subr.bf16.mxu1 %v9074_v17 }
 0x673   : > { %8838 = vmatmul.mubr.msk.f32.vlgmr.msra.gmra.mrb[42].mxu1 %vm3814_vm8, %v4775_v43 }
 0x674   : > { %8971 = vmatpush3.bf16.msra.mxu1 %v8970_v22  ;;  %8851 = vmatprep.mubr.msk.f32.mxu1 %vm9069_vm4, %v10133_v0 }
 0x675   : > { %8861 = vmatprep.subr.mxu1 %v10133_v0 }
 0x677   : > { %8852 = vmatmul.mubr.msk.f32.vlgmr.msra.gmra.mrb[44].mxu1 %vm3814_vm8, %v4782_v39 }
 0x678   : > { %8863 = vmatprep.mubr.msk.f32.mxu1 %vm9069_vm4, %v10133_v0 }
 0x68a   : > { %v4055_v2 = vpop.trf.xlu0 }
 0x68b   : > { %8747 = vmatmul.mubr.msk.f32.vlgmr.msra.gmra.mrb[26].mxu0 %vm3814_vm8, %v4055_v2 }
 0x68c   : > { %8932 = vmatpush3.bf16.msra.mxu0 %v8931_v62  ;;  %8760 = vmatprep.mubr.msk.f32.mxu0 %vm9069_vm4, %v10133_v0 }
 0x68d   : > { %8936 = vmatprep.subr.bf16.mxu0 %v9074_v17 }
 0x68f   : > { %8761 = vmatmul.mubr.msk.f32.vlgmr.msra.gmra.mrb[28].mxu0 %vm3814_vm8, %v4715_v31  ;;  %v5971_v31 = vpop.trf.xlu1 }
 0x690   : > { %8938 = vmatpush3.bf16.msra.mxu0 %v8937_v18  ;;  %8774 = vmatprep.mubr.msk.f32.mxu0 %vm9069_vm4, %v10133_v0  ;;  %v611_v18 = vcombine.high %v10137_v23, %v10133_v0 }
 0x691   : > { %8942 = vmatprep.subr.bf16.mxu0 %v9074_v17 }
 0x692   : > { %v6003_v26 = vpop.trf.xlu0 }
 0x693   : > { %8775 = vmatmul.mubr.msk.f32.vlgmr.msra.gmra.mrb[30].mxu0 %vm3814_vm8, %v4716_v27 }
 0x694   : > { %8944 = vmatpush3.bf16.msra.mxu0 %v8943_v32  ;;  %8788 = vmatprep.mubr.msk.f32.mxu0 %vm9069_vm4, %v10133_v0 }
 0x695   : > { %8948 = vmatprep.subr.bf16.mxu0 %v9074_v17 }
 0x697   : > { %8789 = vmatmul.mubr.msk.f32.vlgmr.msra.gmra.mrb[32].mxu0 %vm3814_vm8, %v4717_v10 }
 0x698   : > { %8950 = vmatpush3.bf16.msra.mxu0 %v8949_v7  ;;  %8802 = vmatprep.mubr.msk.f32.mxu0 %vm9069_vm4, %v10133_v0 }
 0x699   : > { %8954 = vmatprep.subr.bf16.mxu0 %v9074_v17 }
 0x69b   : > { %8803 = vmatmul.mubr.msk.f32.vlgmr.msra.gmra.mrb[34].mxu0 %vm3814_vm8, %v4718_v24 }
 0x69c   : > { %8956 = vmatpush3.bf16.msra.mxu0 %v8955_v44  ;;  %8816 = vmatprep.mubr.msk.f32.mxu0 %vm9069_vm4, %v10133_v0 }
 0x69d   : > { %8960 = vmatprep.subr.bf16.mxu0 %v9074_v17 }
 0x69f   : > { %8817 = vmatmul.mubr.msk.f32.vlgmr.msra.gmra.mrb[36].mxu0 %vm3814_vm8, %v4783_v25 }
 0x6a0   : > { %8962 = vmatpush3.bf16.msra.mxu0 %v8961_v58  ;;  %8830 = vmatprep.mubr.msk.f32.mxu0 %vm9069_vm4, %v10133_v0 }
 0x6a1   : > { %8966 = vmatprep.subr.bf16.mxu0 %v9074_v17 }
 0x6a3   : > { %8831 = vmatmul.mubr.msk.f32.vlgmr.msra.gmra.mrb[38].mxu0 %vm3814_vm8, %v4784_v56 }
 0x6a4   : > { %8968 = vmatpush3.bf16.msra.mxu0 %v8967_v33  ;;  %8844 = vmatprep.mubr.msk.f32.mxu0 %vm9069_vm4, %v10133_v0 }
 0x6a5   : > { %8972 = vmatprep.subr.bf16.mxu0 %v9074_v17 }
 0x6a7   : > { %8845 = vmatmul.mubr.msk.f32.vlgmr.msra.gmra.mrb[40].mxu0 %vm3814_vm8, %v4785_v4 }
 0x6a8   : > { %8974 = vmatpush3.bf16.msra.mxu0 %v8973_v41  ;;  %8858 = vmatprep.mubr.msk.f32.mxu0 %vm9069_vm4, %v10133_v0 }
 0x6a9   : > { %8866 = vmatprep.subr.mxu0 %v10133_v0 }
 0x6ab   : > { %8859 = vmatmul.mubr.msk.f32.vlgmr.msra.gmra.mrb[42].mxu0 %vm3814_vm8, %v4786_v46 }
 0x6ac   : > { %8868 = vmatprep.mubr.msk.f32.mxu0 %vm9069_vm4, %v10133_v0 }
 0x722   : > { %v9905_v50 = vpop.f32.mrb[26].mxu1 }
 0x723   : > { %v8727_v53 = vpop.f32.mrb[27].mxu1 }
 0x72a   : > { %v9907_v49 = vpop.f32.mrb[28].mxu1 }
 0x72b   : > { %v8741_v17 = vpop.f32.mrb[29].mxu1 }
 0x72e   : > { %v4856_v21 = vpop.f32.mrb[30].mxu1 }
 0x72f   : > { %6475 = vxpose.xlu1.b32.start.end [1/1] (short) (narrow) %v4856_v21, 8  ;;  %v8755_v3 = vpop.f32.mrb[31].mxu1 }
 0x732   : > { %v5002_v54 = vpop.f32.mrb[32].mxu1 }
 0x733   : > { %6539 = vxpose.xlu1.b32.start.end [1/1] (short) (narrow) %v5002_v54, 8  ;;  %v8769_v59 = vpop.f32.mrb[33].mxu1 }
 0x736   : > { %v5148_v13 = vpop.f32.mrb[34].mxu1 }
 0x737   : > { %6603 = vxpose.xlu1.b32.start.end [1/1] (short) (narrow) %v5148_v13, 8  ;;  %v8783_v48 = vpop.f32.mrb[35].mxu1 }
 0x738   : > { %v9909_v6 = vpop.f32.mrb[24].mxu0 }
 0x739   : > { %v8734_v63 = vpop.f32.mrb[25].mxu0 }
 0x73a   : > { %v5294_v5 = vpop.f32.mrb[36].mxu1 }
 0x73b   : > { %6667 = vxpose.xlu1.b32.start.end [1/1] (short) (narrow) %v5294_v5, 8  ;;  %v8797_v20 = vpop.f32.mrb[37].mxu1 }
 0x73e   : > { %v5440_v52 = vpop.f32.mrb[38].mxu1 }
 0x73f   : > { %6731 = vxpose.xlu1.b32.start.end [1/1] (short) (narrow) %v5440_v52, 8  ;;  %v8811_v37 = vpop.f32.mrb[39].mxu1 }
 0x742   : > { %v5586_v9 = vpop.f32.mrb[40].mxu1 }
 0x743   : > { %6795 = vxpose.xlu1.b32.start.end [1/1] (short) (narrow) %v5586_v9, 8  ;;  %v8825_v12 = vpop.f32.mrb[41].mxu1 }
 0x746   : > { %v5732_v45 = vpop.f32.mrb[42].mxu1 }
 0x747   : > { %6859 = vxpose.xlu1.b32.start.end [1/1] (short) (narrow) %v5732_v45, 8  ;;  %v8839_v57 = vpop.f32.mrb[43].mxu1 }
 0x74a   : > { %v5878_v42 = vpop.f32.mrb[44].mxu1 }
 0x74b   : > { %6923 = vxpose.xlu1.b32.start.end [1/1] (short) (narrow) %v5878_v42, 8  ;;  %v8853_v61 = vpop.f32.mrb[45].mxu1 }
 0x74f   : > { %6019 = vxpose.xlu1.b32.start.end [1/1] (short) (narrow) %v10137_v23, 8 }
 0x75e   : > { %v9912_v28 = vpop.f32.mrb[26].mxu0 }
 0x75f   : > { %v8748_v8 = vpop.f32.mrb[27].mxu0 }
 0x762   : > { %v4929_v14 = vpop.f32.mrb[28].mxu0 }
 0x763   : > { %6507 = vxpose.xlu0.b32.start.end [1/1] (short) (narrow) %v4929_v14, 8  ;;  %v8762_v60 = vpop.f32.mrb[29].mxu0 }
 0x766   : > { %v5075_v30 = vpop.f32.mrb[30].mxu0 }
 0x767   : > { %6571 = vxpose.xlu0.b32.start.end [1/1] (short) (narrow) %v5075_v30, 8  ;;  %v8776_v1 = vpop.f32.mrb[31].mxu0 }
 0x76a   : > { %v5221_v35 = vpop.f32.mrb[32].mxu0 }
 0x76b   : > { %6635 = vxpose.xlu0.b32.start.end [1/1] (short) (narrow) %v5221_v35, 8  ;;  %v8790_v36 = vpop.f32.mrb[33].mxu0 }
 0x76e   : > { %v5367_v22 = vpop.f32.mrb[34].mxu0 }
 0x76f   : > { %6699 = vxpose.xlu0.b32.start.end [1/1] (short) (narrow) %v5367_v22, 8  ;;  %v8804_v43 = vpop.f32.mrb[35].mxu0 }
 0x772   : > { %v5513_v47 = vpop.f32.mrb[36].mxu0 }
 0x773   : > { %6763 = vxpose.xlu0.b32.start.end [1/1] (short) (narrow) %v5513_v47, 8  ;;  %v8818_v39 = vpop.f32.mrb[37].mxu0 }
 0x776   : > { %v5659_v51 = vpop.f32.mrb[38].mxu0 }
 0x777   : > { %6827 = vxpose.xlu0.b32.start.end [1/1] (short) (narrow) %v5659_v51, 8  ;;  %v8832_v55 = vpop.f32.mrb[39].mxu0 }
 0x77a   : > { %v5805_v62 = vpop.f32.mrb[40].mxu0 }
 0x77b   : > { %6891 = vxpose.xlu0.b32.start.end [1/1] (short) (narrow) %v5805_v62, 8  ;;  %v8846_v2 = vpop.f32.mrb[41].mxu0 }
 0x77e   : > { %v5951_v19 = vpop.f32.mrb[42].mxu0 }
 0x77f   : > { %6955 = vxpose.xlu0.b32.start.end [1/1] (short) (narrow) %v5951_v19, 8  ;;  %v8860_v29 = vpop.f32.mrb[43].mxu0 }
 0x783   : > { %6051 = vxpose.xlu0.b32.start.end [1/1] (short) (narrow) %v611_v18, 8 }
 0x7af   : > { %v6491_v11 = vpop.trf.xlu1 }
 0x7b3   : > { %v6555_v32 = vpop.trf.xlu1 }
 0x7b4   : > { %v6987_v45 = vcombine.low %v6491_v11, %v6555_v32 }
 0x7b6   : > { %v6994_v22 = vrot.slane %v6987_v45, %v9229_v34 }
 0x7b7   : > { %v6619_v27 = vpop.trf.xlu1 }
 0x7bb   : > { %v6683_v7 = vpop.trf.xlu1 }
 0x7bc   : > { %v7003_v20 = vcombine.low %v6619_v27, %v6683_v7 }
 0x7be   : > { %v7010_v8 = vrot.slane %v7003_v20, %v9229_v34 }
 0x7bf   : > { %v6747_v44 = vpop.trf.xlu1 }
 0x7c3   : > { %v6811_v25 = vpop.trf.xlu1 }
 0x7c4   : > { %v7055_v43 = vcombine.low %v6747_v44, %v6811_v25 }
 0x7c6   : > { %v7062_v29 = vrot.slane %v7055_v43, %v9229_v34 }
 0x7c7   : > { %v6875_v56 = vpop.trf.xlu1 }
 0x7cb   : > { %v6939_v4 = vpop.trf.xlu1 }
 0x7cc   : > { %v7071_v14 = vcombine.low %v6875_v56, %v6939_v4 }
 0x7ce   : > { %v7078_v51 = vrot.slane %v7071_v14, %v9229_v34 }
 0x7cf   : > { %v6035_v53 = vpop.trf.xlu1 }
 0x7d0   : > { %v6083_v21 = vcombine.low %v5971_v31, %v6035_v53  ;;  %v6084_v13 = vcombine.high %v5971_v31, %v6035_v53 }
 0x7d2   : > { %v6091_v48 = vrot.slane %v6083_v21, %v9229_v34  ;;  %v6098_v57 = vrot.slane %v6084_v13, %v9229_v34 }
 0x7e3   : > { %v6523_v10 = vpop.trf.xlu0 }
 0x7e7   : > { %v6587_v24 = vpop.trf.xlu0 }
 0x7e8   : > { %v6995_v52 = vcombine.low %v6523_v10, %v6587_v24 }
 0x7ea   : > { %v7002_v60 = vrot.slane %v6995_v52, %v9229_v34 }
 0x7eb   : > { %v6651_v58 = vpop.trf.xlu0 }
 0x7ec   : > { %v7019_v55 = vcombine.low %v6994_v22, %v7002_v60  ;;  %v7020_v44 = vcombine.high %v6994_v22, %v7002_v60 }
 0x7ee   : > { %v7027_v27 = vrot.slane %v7019_v55, %v9232_v40  ;;  %v7034_v4 = vrot.slane %v7020_v44, %v9232_v40 }
 0x7ef   : > { %v6715_v33 = vpop.trf.xlu0 }
 0x7f0   : > { %v7011_v63 = vcombine.low %v6651_v58, %v6715_v33 }
 0x7f2   : > { %v7018_v42 = vrot.slane %v7011_v63, %v9229_v34 }
 0x7f3   : > { %v6779_v38 = vpop.trf.xlu0 }
 0x7f4   : > { %v7035_v47 = vcombine.low %v7010_v8, %v7018_v42 }
 0x7f6   : > { %v7043_v31 = vrot.slane %v7035_v47, %v9232_v40 }
 0x7f7   : > { %v6843_v41 = vpop.trf.xlu0 }
 0x7f8   : > { %v7063_v30 = vcombine.low %v6779_v38, %v6843_v41  ;;  %v7051_v7 = vcombine.low %v7027_v27, %v7043_v31  ;;  %v7052_v24 = vcombine.high %v7027_v27, %v7043_v31 }
 0x7fa   : > { %v7070_v62 = vrot.slane %v7063_v30, %v9229_v34 }
 0x7fb   : > { %v6907_v46 = vpop.trf.xlu0 }
 0x7fc   : > { %v7087_v11 = vcombine.low %v7062_v29, %v7070_v62  ;;  %v7088_v38 = vcombine.high %v7062_v29, %v7070_v62 }
 0x7fe   : > { %v7095_v58 = vrot.slane %v7087_v11, %v9232_v40 }
 0x7ff   : > { %v6971_v17 = vpop.trf.xlu0 }
 0x800   : > { %v7079_v61 = vcombine.low %v6907_v46, %v6971_v17 }
 0x802   : > { %v7086_v39 = vrot.slane %v7079_v61, %v9229_v34 }
 0x803   : > { %v6067_v3 = vpop.trf.xlu0 }
 0x804   : > { %v6099_v54 = vcombine.low %v6003_v26, %v6067_v3  ;;  %v6100_v59 = vcombine.high %v6003_v26, %v6067_v3  ;;  %v7103_v18 = vcombine.low %v7078_v51, %v7086_v39  ;;  %v7036_v26 = vcombine.high %v7010_v8, %v7018_v42 }
 0x805   : > { %v7104_v25 = vcombine.high %v7078_v51, %v7086_v39  ;;  %v7102_v3 = vrot.slane %v7088_v38, %v9232_v40 }
 0x806   : > { %v6107_v5 = vrot.slane %v6099_v54, %v9229_v34  ;;  %v9919_v37 = vrot.slane %v6100_v59, %v9229_v34  ;;  %v7111_v10 = vrot.slane %v7103_v18, %v9232_v40  ;;  %v7050_v56 = vrot.slane %v7036_v26, %v9232_v40 }
 0x807   : > { %v7118_v53 = vrot.slane %v7104_v25, %v9232_v40 }
 0x808   : > { %v6116_v9 = vcombine.high %v6091_v48, %v6107_v5  ;;  %v6115_v12 = vcombine.low %v6091_v48, %v6107_v5  ;;  %v6131_v1 = vcombine.low %v6098_v57, %v9919_v37  ;;  %v7119_v33 = vcombine.low %v7095_v58, %v7111_v10 }
 0x809   : > { %v7120_v41 = vcombine.high %v7095_v58, %v7111_v10  ;;  %v7053_v46 = vcombine.low %v7034_v4, %v7050_v56  ;;  %v6132_v17 = vcombine.high %v6098_v57, %v9919_v37  ;;  %v7054_v21 = vcombine.high %v7034_v4, %v7050_v56 }
 0x80a   : > { %v6123_v23 = vrot.slane %v6115_v12, %v9232_v40  ;;  %v6130_v36 = vrot.slane %v6116_v9, %v9232_v40  ;;  %v6139_v19 = vrot.slane %v6131_v1, %v9232_v40  ;;  %v7121_v54 = vcombine.low %v7102_v3, %v7118_v53 }
 0x80b   : > { %v7122_v59 = vcombine.high %v7102_v3, %v7118_v53  ;;  %v6146_v13 = vrot.slane %v6132_v17, %v9232_v40  ;;  %v8049_v53 = vld [vmem:[%s10117_s3] sm:$0xff]  ;;  %v8050_v17 = vld [vmem:[%s10117_s3 + $0x8] sm:$0xff] }
 0x80c   : > { %6151 = vxpose.xlu1.b32.start.end [1/1] (short) (narrow) %v6123_v23, 8  ;;  %v6147_v35 = vcombine.high %v6123_v23, %v10133_v0  ;;  %v6148_v2 = vcombine.high %v6130_v36, %v10133_v0  ;;  %v6149_v32 = vcombine.high %v6139_v19, %v10133_v0 }
 0x80d   : > { %v6150_v48 = vcombine.high %v6146_v13, %v10133_v0 }
 0x80e   : > { %6183 = vxpose.xlu0.b32.start.end [1/1] (short) (narrow) %v6147_v35, 8 }
 0x810   : > { %6215 = vxpose.xlu1.b32.start.end [1/1] (short) (narrow) %v6130_v36, 8 }
 0x812   : > { %6247 = vxpose.xlu0.b32.start.end [1/1] (short) (narrow) %v6148_v2, 8 }
 0x814   : > { %6279 = vxpose.xlu1.b32.start.end [1/1] (short) (narrow) %v6139_v19, 8 }
 0x816   : > { %6311 = vxpose.xlu0.b32.start.end [1/1] (short) (narrow) %v6149_v32, 8 }
 0x818   : > { %7123 = vxpose.xlu1.b32.start [1/2] (short) (narrow) %v7051_v7, 8 }
 0x81a   : > { %7155 = vxpose.xlu0.b32.start [1/2] (short) (narrow) %v7052_v24, 8 }
 0x81c   : > { %7124 = vxpose.xlu1.b32.end [2/2] (short) (narrow) %v7119_v33, 8 }
 0x81e   : > { %7156 = vxpose.xlu0.b32.end [2/2] (short) (narrow) %v7120_v41, 8 }
 0x820   : > { %7187 = vxpose.xlu1.b32.start [1/2] (short) (narrow) %v7053_v46, 8  ;;  %v9075_v46 = vmov 0  }
 0x822   : > { %7219 = vxpose.xlu0.b32.start [1/2] (short) (narrow) %v7054_v21, 8  ;;  %v9076_v21 = vmov 1  }
 0x824   : > { %7188 = vxpose.xlu1.b32.end [2/2] (short) (narrow) %v7121_v54, 8 }
 0x826   : > { %7220 = vxpose.xlu0.b32.end [2/2] (short) (narrow) %v7122_v59, 8 }
 0x828   : > { %6343 = vxpose.xlu1.b32.start.end [1/1] (short) (narrow) %v6146_v13, 8 }
 0x82a   : > { %6375 = vxpose.xlu0.b32.start.end [1/1] (short) (narrow) %v6150_v48, 8 }
 0x82c   : > { %4387 = vxpose.xlu1.b32.start.end [1/1] (short) (narrow) %v9905_v50, 16 }
 0x82e   : > { %4419 = vxpose.xlu0.b32.start.end [1/1] (short) (narrow) %v9909_v6, 16 }
 0x831   : > { %4451 = vxpose.xlu1.b32.start.end [1/1] (short) (narrow) %v9907_v49, 16 }
 0x833   : > { %4483 = vxpose.xlu0.b32.start.end [1/1] (short) (narrow) %v9912_v28, 16 }
 0x88c   : > { %v6167_v63 = vpop.trf.xlu1 }
 0x88e   : > { %v6199_v5 = vpop.trf.xlu0 }
 0x890   : > { %v6231_v20 = vpop.trf.xlu1 }
 0x891   : > { %v6407_v8 = vcombine.low %v6167_v63, %v6231_v20 }
 0x892   : > { %v6263_v52 = vpop.trf.xlu0 }
 0x893   : > { %v6415_v6 = vcombine.low %v6199_v5, %v6263_v52  ;;  %v6414_v60 = vrot.slane %v6407_v8, %v9229_v34 }
 0x894   : > { %v6295_v37 = vpop.trf.xlu1 }
 0x895   : > { %v6422_v30 = vrot.slane %v6415_v6, %v9229_v34 }
 0x896   : > { %v6327_v9 = vpop.trf.xlu0 }
 0x897   : > { %v6439_v39 = vcombine.low %v6414_v60, %v6422_v30  ;;  %v6440_v29 = vcombine.high %v6414_v60, %v6422_v30 }
 0x898   : > { %v7139_v12 = vpop.trf.xlu1 }
 0x899   : > { %v6447_v18 = vrot.slane %v6439_v39, %v9232_v40  ;;  %v6454_v7 = vrot.slane %v6440_v29, %v9232_v40 }
 0x89a   : > { %v7171_v45 = vpop.trf.xlu0 }
 0x8a0   : > { %v7203_v57 = vpop.trf.xlu1 }
 0x8a1   : > { %v7251_v42 = vcombine.low %v7139_v12, %v7203_v57 }
 0x8a2   : > { %v7235_v61 = vpop.trf.xlu0 }
 0x8a3   : > { %v7258_v23 = vrot.slane %v7251_v42, %v9229_v34  ;;  %v7259_v50 = vcombine.low %v7171_v45, %v7235_v61 }
 0x8a5   : > { %v7266_v49 = vrot.slane %v7259_v50, %v9229_v34 }
 0x8a7   : > { %v7267_v14 = vcombine.low %v7258_v23, %v7266_v49  ;;  %v7268_v47 = vcombine.high %v7258_v23, %v7266_v49 }
 0x8a8   : > { %v6359_v28 = vpop.trf.xlu1 }
 0x8a9   : > { %v7275_v1 = vrot.slane %v7267_v14, %v9232_v40  ;;  %v6423_v35 = vcombine.low %v6295_v37, %v6359_v28  ;;  %v7282_v19 = vrot.slane %v7268_v47, %v9232_v40 }
 0x8aa   : > { %v6391_v36 = vpop.trf.xlu0 }
 0x8ab   : > { %v7283_v22 = vcombine.high %v7275_v1, %v10133_v0  ;;  %v6431_v43 = vcombine.low %v6327_v9, %v6391_v36  ;;  %8862 = vmatpush3.msk.msra.mxu1 %vm7288_vm11, %v7275_v1  ;;  %v6430_v51 = vrot.slane %v6423_v35, %v9229_v34  ;;  %v7284_v26 = vcombine.high %v7282_v19, %v10133_v0 }
 0x8ac   : > { %8871 = vmatprep.subr.mxu1 %v10133_v0  ;;  %v4403_v3 = vpop.trf.xlu1 }
 0x8ad   : > { %v6438_v55 = vrot.slane %v6431_v43, %v9229_v34  ;;  %8867 = vmatpush3.msk.msra.mxu0 %vm7288_vm11, %v7283_v22 }
 0x8ae   : > { %8876 = vmatprep.subr.mxu0 %v10133_v0  ;;  %v4435_v54 = vpop.trf.xlu0 }
 0x8af   : > { %v6455_v62 = vcombine.low %v6430_v51, %v6438_v55  ;;  %v6456_v2 = vcombine.high %v6430_v51, %v6438_v55 }
 0x8b0   : > { %v4404_v59 = vpop.trf.xlu1 }
 0x8b1   : > { %v6463_v31 = vrot.slane %v6455_v62, %v9232_v40  ;;  %v6470_v11 = vrot.slane %v6456_v2, %v9232_v40 }
 0x8b2   : > { %v4436_v13 = vpop.trf.xlu0 }
 0x8b3   : > { %v6471_v32 = vcombine.low %v6447_v18, %v6463_v31  ;;  %v6472_v27 = vcombine.high %v6447_v18, %v6463_v31  ;;  %v6473_v10 = vcombine.low %v6454_v7, %v6470_v11  ;;  %v6474_v44 = vcombine.high %v6454_v7, %v6470_v11 }
 0x8b4   : > { %v4467_v48 = vpop.trf.xlu1 }
 0x8b5   : > { %8864 = vmatmul.mubr.msk.f32.vlgmr.msra.gmra.mrb[46].mxu1 %vm1331_vm6, %v6471_v32  ;;  %8869 = vmatmul.mubr.msk.f32.vlgmr.msra.gmra.mrb[44].mxu0 %vm1331_vm6, %v6472_v27  ;;  %v4515_v52 = vcombine.low %v4403_v3, %v4467_v48  ;;  %v4516_v37 = vcombine.high %v4403_v3, %v4467_v48 }
 0x8b6   : > { %8872 = vmatpush3.msk.msra.mxu1 %vm7288_vm11, %v7282_v19  ;;  %8877 = vmatpush3.msk.msra.mxu0 %vm7288_vm11, %v7284_v26  ;;  %v4499_v63 = vpop.trf.xlu0 }
 0x8b7   : > { %8873 = vmatprep.mubr.msk.f32.mxu1 %vm9069_vm4, %v10133_v0  ;;  %8878 = vmatprep.mubr.msk.f32.mxu0 %vm9069_vm4, %v10133_v0  ;;  %v4531_v9 = vcombine.low %v4435_v54, %v4499_v63  ;;  %v4532_v12 = vcombine.high %v4435_v54, %v4499_v63  ;;  %v4523_v23 = vrot.slane %v4515_v52, %v9229_v34 }
 0x8b8   : > { %v4468_v5 = vpop.trf.xlu1  ;;  %v4530_v50 = vrot.slane %v4516_v37, %v9229_v34 }
 0x8b9   : > { %8874 = vmatmul.mubr.msk.f32.vlgmr.msra.gmra.mrb[48].mxu1 %vm1331_vm6, %v6473_v10  ;;  %8879 = vmatmul.mubr.msk.f32.vlgmr.msra.gmra.mrb[46].mxu0 %vm1331_vm6, %v6474_v44  ;;  %v4583_v45 = vcombine.low %v4404_v59, %v4468_v5  ;;  %v4584_v57 = vcombine.high %v4404_v59, %v4468_v5  ;;  %v4539_v8 = vrot.slane %v4531_v9, %v9229_v34 }
 0x8ba   : > { %v4500_v20 = vpop.trf.xlu0  ;;  %v4546_v6 = vrot.slane %v4532_v12, %v9229_v34 }
 0x8bb   : > { %v4599_v42 = vcombine.low %v4436_v13, %v4500_v20  ;;  %v4600_v61 = vcombine.high %v4436_v13, %v4500_v20  ;;  %v4591_v49 = vrot.slane %v4583_v45, %v9229_v34  ;;  %v4598_v14 = vrot.slane %v4584_v57, %v9229_v34 }
 0x8bc   : > { %v4547_v35 = vcombine.low %v4523_v23, %v4539_v8  ;;  %v4548_v36 = vcombine.high %v4523_v23, %v4539_v8  ;;  %v4563_v22 = vcombine.low %v4530_v50, %v4546_v6  ;;  %v4564_v43 = vcombine.high %v4530_v50, %v4546_v6 }
 0x8bd   : > { %v4607_v28 = vrot.slane %v4599_v42, %v9229_v34  ;;  %v4614_v60 = vrot.slane %v4600_v61, %v9229_v34 }
 0x8be   : > { %v4555_v19 = vrot.slane %v4547_v35, %v9232_v40  ;;  %v4562_v29 = vrot.slane %v4548_v36, %v9232_v40  ;;  %v4571_v18 = vrot.slane %v4563_v22, %v9232_v40  ;;  %v4578_v31 = vrot.slane %v4564_v43, %v9232_v40 }
 0x8bf   : > { %v4615_v47 = vcombine.low %v4591_v49, %v4607_v28  ;;  %v4616_v39 = vcombine.high %v4591_v49, %v4607_v28  ;;  %v4631_v51 = vcombine.low %v4598_v14, %v4614_v60  ;;  %v4632_v55 = vcombine.high %v4598_v14, %v4614_v60 }
 0x8c1   : > { %v9999_v11 = vrot.slane %v4615_v47, %v9232_v40  ;;  %v10002_v32 = vrot.slane %v4616_v39, %v9232_v40  ;;  %v10005_v27 = vrot.slane %v4631_v51, %v9232_v40  ;;  %v10008_v26 = vrot.slane %v4632_v55, %v9232_v40 }
 0x8c3   : > { %v4648_v3 = vcombine.high %v10002_v32, %v10133_v0  ;;  %v4649_v54 = vcombine.high %v10005_v27, %v10133_v0  ;;  %v4650_v59 = vcombine.high %v10008_v26, %v10133_v0 }
 0x988   : > { %v7358_v24 = vpop.f32.mrb[46].mxu1  ;;  %v7434_v58 = vpop.f32.mrb[44].mxu0 }
 0x989   : > { %7622 = vxpose.xlu0.b32.start.end [1/1] (short) (narrow) %v7434_v58, 16  ;;  %v8870_v25 = vpop.f32.mrb[45].mxu0  ;;  %7590 = vxpose.xlu1.b32.start.end [1/1] (short) (narrow) %v7358_v24, 16  ;;  %v8865_v33 = vpop.f32.mrb[47].mxu1 }
 0x98a   : > { %v4579_v33 = vcombine.high %v4555_v19, %v10133_v0 }
 0x98c   : > { %v7510_v56 = vpop.f32.mrb[48].mxu1  ;;  %v7586_v38 = vpop.f32.mrb[46].mxu0 }
 0x98d   : > { %v8875_v41 = vpop.f32.mrb[49].mxu1  ;;  %v8880_v4 = vpop.f32.mrb[47].mxu0 }
 0x98e   : > { %7686 = vxpose.xlu0.b32.start.end [1/1] (short) (narrow) %v7586_v38, 16  ;;  %7654 = vxpose.xlu1.b32.start.end [1/1] (short) (narrow) %v7510_v56, 16  ;;  %v4580_v56 = vcombine.high %v4562_v29, %v10133_v0  ;;  %v4581_v38 = vcombine.high %v4571_v18, %v10133_v0  ;;  %v4582_v41 = vcombine.high %v4578_v31, %v10133_v0 }
 0x9ac   : > { %9015 = vset.pattern.permute.xlu1 %v9075_v46 }
 0x9b0   : > { %8053 = vperm.xlu1 %9015, %v8049_v53  }
 0x9b4   : > { %8058 = vperm.xlu1 %9015, %v8050_v17  }
 0x9b7   : > { %9017 = vset.pattern.permute.xlu0 %v9076_v21 }
 0x9b8   : > { %9016 = vset.pattern.permute.xlu1 %v9076_v21  ;;  %v4647_v21 = vcombine.high %v9999_v11, %v10133_v0 }
 0x9b9   : > { %8073 = vperm.xlu1 %9016, %v8049_v53  }
 0x9bd   : > { %8077 = vperm.xlu1 %9016, %v8050_v17  }
 0xa09   : > { %v7606_v30 = vpop.trf.xlu1  ;;  %v7638_v1 = vpop.trf.xlu0 }
 0xa0d   : > { %v7607_v62 = vpop.trf.xlu1  ;;  %v7639_v2 = vpop.trf.xlu0 }
 0xa11   : > { %v7670_v7 = vpop.trf.xlu1  ;;  %v7702_v10 = vpop.trf.xlu0 }
 0xa12   : > { %v7718_v44 = vcombine.low %v7606_v30, %v7670_v7  ;;  %v7719_v24 = vcombine.high %v7606_v30, %v7670_v7  ;;  %v7734_v58 = vcombine.low %v7638_v1, %v7702_v10  ;;  %v7735_v25 = vcombine.high %v7638_v1, %v7702_v10 }
 0xa14   : > { %v7726_v4 = vrot.slane %v7718_v44, %v9229_v34  ;;  %v7733_v46 = vrot.slane %v7719_v24, %v9229_v34  ;;  %v7742_v53 = vrot.slane %v7734_v58, %v9229_v34  ;;  %v7749_v17 = vrot.slane %v7735_v25, %v9229_v34 }
 0xa15   : > { %v7671_v13 = vpop.trf.xlu1  ;;  %v7703_v48 = vpop.trf.xlu0 }
 0xa16   : > { %v7750_v63 = vcombine.low %v7726_v4, %v7742_v53  ;;  %v7751_v5 = vcombine.high %v7726_v4, %v7742_v53  ;;  %v7766_v20 = vcombine.low %v7733_v46, %v7749_v17  ;;  %v7767_v52 = vcombine.high %v7733_v46, %v7749_v17 }
 0xa17   : > { %v7786_v37 = vcombine.low %v7607_v62, %v7671_v13  ;;  %v7787_v9 = vcombine.high %v7607_v62, %v7671_v13  ;;  %v7802_v12 = vcombine.low %v7639_v2, %v7703_v48  ;;  %v7803_v45 = vcombine.high %v7639_v2, %v7703_v48 }
 0xa18   : > { %v7758_v57 = vrot.slane %v7750_v63, %v9232_v40  ;;  %v7765_v42 = vrot.slane %v7751_v5, %v9232_v40  ;;  %v7774_v61 = vrot.slane %v7766_v20, %v9232_v40  ;;  %v7781_v23 = vrot.slane %v7767_v52, %v9232_v40 }
 0xa19   : > { %v7794_v50 = vrot.slane %v7786_v37, %v9229_v34  ;;  %v7801_v8 = vrot.slane %v7787_v9, %v9229_v34  ;;  %v7810_v6 = vrot.slane %v7802_v12, %v9229_v34  ;;  %v7817_v49 = vrot.slane %v7803_v45, %v9229_v34 }
 0xa1a   : > { %v7782_v14 = vcombine.high %v7758_v57, %v10133_v0  ;;  %v7783_v28 = vcombine.high %v7765_v42, %v10133_v0  ;;  %v7784_v60 = vcombine.high %v7774_v61, %v10133_v0  ;;  %v7785_v30 = vcombine.high %v7781_v23, %v10133_v0 }
 0xa1b   : > { %v7854_v1 = vadd.f32 %v7758_v57, %v4555_v19  ;;  %v7856_v35 = vadd.f32 %v7765_v42, %v4562_v29  ;;  %v7858_v36 = vadd.f32 %v7774_v61, %v4571_v18  ;;  %v7860_v22 = vadd.f32 %v7781_v23, %v4578_v31 }
 0xa1c   : > { %v7855_v43 = vadd.f32 %v7782_v14, %v4579_v33  ;;  %v7857_v47 = vadd.f32 %v7783_v28, %v4580_v56  ;;  %v7859_v39 = vadd.f32 %v7784_v60, %v4581_v38  ;;  %v7861_v51 = vadd.f32 %v7785_v30, %v4582_v41 }
 0xa1d   : > { %v7870_v55 = vcombine.low %v7854_v1, %v7856_v35  ;;  %v7886_v62 = vcombine.low %v7858_v36, %v7860_v22  ;;  %v7818_v2 = vcombine.low %v7794_v50, %v7810_v6  ;;  %v7819_v7 = vcombine.high %v7794_v50, %v7810_v6 }
 0xa1e   : > { %v7878_v10 = vcombine.low %v7855_v43, %v7857_v47  ;;  %v7894_v44 = vcombine.low %v7859_v39, %v7861_v51  ;;  %v7834_v24 = vcombine.low %v7801_v8, %v7817_v49  ;;  %v7835_v58 = vcombine.high %v7801_v8, %v7817_v49 }
 0xa1f   : > { %v7826_v25 = vrot.slane %v7818_v2, %v9232_v40  ;;  %v7833_v4 = vrot.slane %v7819_v7, %v9232_v40  ;;  %v7877_v19 = vrot.slane %v7870_v55, %v9229_v34  ;;  %v7893_v29 = vrot.slane %v7886_v62, %v9229_v34 }
 0xa20   : > { %v7842_v18 = vrot.slane %v7834_v24, %v9232_v40  ;;  %v7849_v31 = vrot.slane %v7835_v58, %v9232_v40  ;;  %v7885_v33 = vrot.slane %v7878_v10, %v9229_v34  ;;  %v7901_v56 = vrot.slane %v7894_v44, %v9229_v34 }
 0xa21   : > { %v7850_v38 = vcombine.high %v7826_v25, %v10133_v0  ;;  %v7851_v41 = vcombine.high %v7833_v4, %v10133_v0  ;;  %v7862_v46 = vadd.f32 %v7826_v25, %v9999_v11  ;;  %v7864_v53 = vadd.f32 %v7833_v4, %v10002_v32 }
 0xa22   : > { %v7852_v17 = vcombine.high %v7842_v18, %v10133_v0  ;;  %v7853_v13 = vcombine.high %v7849_v31, %v10133_v0  ;;  %v7866_v48 = vadd.f32 %v7842_v18, %v10005_v27  ;;  %v7868_v63 = vadd.f32 %v7849_v31, %v10008_v26 }
 0xa23   : > { %v7863_v5 = vadd.f32 %v7850_v38, %v4647_v21  ;;  %v7865_v20 = vadd.f32 %v7851_v41, %v4648_v3  ;;  %v7938_v52 = vcombine.low %v7862_v46, %v7864_v53  ;;  %v7903_v37 = vcombine.high %v7877_v19, %v7885_v33 }
 0xa24   : > { %v7867_v9 = vadd.f32 %v7852_v17, %v4649_v54  ;;  %v7869_v12 = vadd.f32 %v7853_v13, %v4650_v59  ;;  %v7954_v45 = vcombine.low %v7866_v48, %v7868_v63  ;;  %v7919_v57 = vcombine.high %v7893_v29, %v7901_v56 }
 0xa25   : > { %v7946_v42 = vcombine.low %v7863_v5, %v7865_v20  ;;  %v7917_v11 = vrot.slane %v7903_v37, %v9232_v40  ;;  %v7902_v32 = vcombine.low %v7877_v19, %v7885_v33  ;;  %v7918_v61 = vcombine.low %v7893_v29, %v7901_v56 }
 0xa26   : > { %v7962_v23 = vcombine.low %v7867_v9, %v7869_v12  ;;  %v7933_v0 = vrot.slane %v7919_v57, %v9232_v40  ;;  %v7945_v21 = vrot.slane %v7938_v52, %v9229_v34  ;;  %v7961_v59 = vrot.slane %v7954_v45, %v9229_v34 }
 0xa27   : > { %v7910_v27 = vrot.slane %v7902_v32, %v9232_v40  ;;  %v7926_v26 = vrot.slane %v7918_v61, %v9232_v40  ;;  %v7953_v3 = vrot.slane %v7946_v42, %v9229_v34 }
 0xa28   : > { %v7936_v54 = vcombine.low %v7917_v11, %v7933_v0  ;;  %v7969_v50 = vrot.slane %v7962_v23, %v9229_v34  ;;  %v7937_v35 = vcombine.high %v7917_v11, %v7933_v0 }
 0xa29   : > { %v7935_v8 = vcombine.high %v7910_v27, %v7926_v26  ;;  %v7971_v6 = vcombine.high %v7945_v21, %v7953_v3  ;;  %v7970_v49 = vcombine.low %v7945_v21, %v7953_v3  ;;  %v7934_v14 = vcombine.low %v7910_v27, %v7926_v26  ;;  %v8093_v27 = vld [vmem:[#allocation3] sm:$0x3] }
 0xa2a   : > { %8016 = vrot.lane.b32.xlu0 %v7936_v54, %s9077_s22  ;;  %v7987_v28 = vcombine.high %v7961_v59, %v7969_v50  ;;  %v7986_v60 = vcombine.low %v7961_v59, %v7969_v50  ;;  %v8102_v59 = vld [vmem:[%s10121_s7] sm:$0xff] (!%p8430_p5)  ;;  %v8103_v50 = vld [vmem:[%s10121_s7 + $0x8] sm:$0xff] (!%p8430_p5) }
 0xa2b   : > { %8008 = vrot.lane.b32.xlu1 %v7935_v8, %s9078_s23  ;;  %v7985_v30 = vrot.slane %v7971_v6, %v9232_v40  ;;  %v7978_v1 = vrot.slane %v7970_v49, %v9232_v40  ;;  %v8104_v8 = vld [vmem:[%s10121_s7 + $0x10] sm:$0xff] (!%p8430_p5)  ;;  %v9081_v6 = vmov (!%p8430_p5), 0.0|0.0   ;;  %v8976_v49 = vpack.c.bf16 (!%p8430_p5), %v8103_v50, %v8102_v59 }
 0xa2c   : > { %v8001_v36 = vrot.slane %v7987_v28, %v9232_v40  ;;  %v7994_v22 = vrot.slane %v7986_v60, %v9232_v40  ;;  %8975 = vmatprep.subr.bf16.mxu0 (!%p8430_p5), %v9081_v6  ;;  %v9083_v28 = vmov (!%p8430_p5), 0.0   ;;  %v8187_v60 = vld [vmem:[%s10123_s9] sm:$0xff] (!%p8430_p5)  ;;  %8981 = vmatprep.subr.bf16.mxu1 (!%p8430_p5), %v9081_v6 }
 0xa2d   : > { %8889 = vmatprep.mubr.msk.f32.mxu0 (!%p8430_p5), %vm9082_vm15, %v9083_v28  ;;  %8900 = vmatprep.mubr.msk.f32.mxu1 (!%p8430_p5), %vm9082_vm15, %v9083_v28 }
 0xa2e   : > { %8024 = vrot.lane.b32.xlu0 %v7937_v35, %s9079_s25  ;;  %v8004_v34 = vcombine.low %v7985_v30, %v8001_v36  ;;  %v8002_v43 = vcombine.low %v7978_v1, %v7994_v22  ;;  %v8003_v47 = vcombine.high %v7978_v1, %v7994_v22  ;;  %v8005_v39 = vcombine.high %v7985_v30, %v8001_v36  ;;  %v8188_v30 = vld [vmem:[%s10123_s9 + $0x8] sm:$0xff] (!%p8430_p5)  ;;  %v8189_v22 = vld [vmem:[%s10123_s9 + $0x10] sm:$0xff] (!%p8430_p5) }
 0xa2f   : > { %v8054_v51 = vpop.permute.xlu1 %8053  ;;  %8977 = vmatpush3.bf16.msra.mxu0 (!%p8430_p5), %v8976_v49  ;;  %v8982_v35 = vpack.c.bf16 (!%p8430_p5), %v8188_v30, %v8187_v60 }
 0xa30   : > { %8018 = vrot.lane.b32.xlu1 %v8004_v34, %s9077_s22  ;;  %8978 = vmatprep.subr.bf16.mxu0 (!%p8430_p5), %v9081_v6  ;;  %v8190_v34 = vld [vmem:[%s10123_s9 + $0x18] sm:$0xff] (!%p8430_p5) }
 0xa31   : > { %8983 = vmatpush3.bf16.msra.mxu1 (!%p8430_p5), %v8982_v35 }
 0xa32   : > { %8010 = vrot.lane.b32.xlu0 %v8003_v47, %s9078_s23  ;;  %8984 = vmatprep.subr.bf16.mxu1 (!%p8430_p5), %v9081_v6  ;;  %v8431_v47 = vld [vmem:[%s10122_s8] ss:$0 sm:$0xff] (!%p8430_p5) }
 0xa33   : > { %v8059_v55 = vpop.permute.xlu1 %8058 }
 0xa34   : > { %8026 = vrot.lane.b32.xlu1 %v8005_v39, %s9079_s25 }
 0xa36   : > { %8037 = vrot.lane.b32.xlu0 %v9192_v15, %s9080_s26 }
 0xa38   : > { %8039 = vrot.lane.b32.xlu1 %v9196_v16, %s9080_s26  ;;  %v8074_v62 = vpop.permute.xlu1 %8073 }
 0xa3c   : > { %v8078_v2 = vpop.permute.xlu1 %8077 }
 0xa9c   : > { %v8017_v7 = vpop.permute.xlu0 %8016 }
 0xa9d   : > { %v8009_v40 = vpop.permute.xlu1 %8008 }
 0xa9e   : > { %v8030_v24 = vsel %vm774_vm5, %v7934_v14, %v8009_v40  ;;  %v8105_v14 = vld [vmem:[%s10121_s7 + $0x18] sm:$0xff] (!%p8430_p5) }
 0xa9f   : > { %v8032_v15 = vsel %vm3814_vm8, %v8030_v24, %v8017_v7  ;;  %v8979_v1 = vpack.c.bf16 (!%p8430_p5), %v8105_v14, %v8104_v8 }
 0xaa0   : > { %v8025_v10 = vpop.permute.xlu0 %8024 }
 0xaa1   : > { %v8035_v29 = vsel %vm8034_vm12, %v8032_v15, %v8025_v10  ;;  %8980 = vmatpush3.bf16.msra.mxu0 (!%p8430_p5), %v8979_v1 }
 0xaa2   : > { %v8019_v44 = vpop.permute.xlu1 %8018 }
 0xaa4   : > { %v8011_v58 = vpop.permute.xlu0 %8010 }
 0xaa5   : > { %v8031_v25 = vsel %vm774_vm5, %v8002_v43, %v8011_v58  ;;  %v8985_v43 = vpack.c.bf16 (!%p8430_p5), %v8190_v34, %v8189_v22 }
 0xaa6   : > { %v8027_v4 = vpop.permute.xlu1 %8026  ;;  %v8033_v19 = vsel %vm3814_vm8, %v8031_v25, %v8019_v44 }
 0xaa7   : > { %v8036_v16 = vsel %vm8034_vm12, %v8033_v19, %v8027_v4  ;;  %8986 = vmatpush3.bf16.msra.mxu1 (!%p8430_p5), %v8985_v43 }
 0xaa8   : > { %v8038_v18 = vpop.permute.xlu0 %8037 }
 0xaa9   : > { %v8043_v31 = vadd.f32 %v8038_v18, %v8035_v29 }
 0xaaa   : > { %v8040_v33 = vpop.permute.xlu1 %8039 }
 0xaab   : > { %v8044_v56 = vadd.f32 %v8040_v33, %v8036_v16  ;;  %v8045_v38 = vmax.f32 %v8043_v31, 0.0 }
 0xaad   : > { %v8046_v41 = vmax.f32 %v8044_v56, 0.0  ;;  %8047 = vst.msk [vmem:[#allocation2] sm:$0xff] %vm466_vm3, %v8045_v38  ;;  %v8061_v46 = vmul.f32 %v8054_v51, %v8045_v38  ;;  %v8080_v53 = vmul.f32 %v8074_v62, %v8045_v38 }
 0xaaf   : > { %8048 = vst.msk [vmem:[#allocation2 + $0x8] sm:$0xff] %vm466_vm3, %v8046_v41  ;;  %v8062_v17 = vmul.f32 %v8059_v55, %v8046_v41  ;;  %v8081_v13 = vmul.f32 %v8078_v2, %v8046_v41  ;;  %v8063_v48 = vsel %vm466_vm3, %v8061_v46, -inf  ;;  %v8082_v63 = vsel %vm466_vm3, %v8080_v53, -inf  ;;  %v8433_v2 = vld [vmem:[#allocation4] ss:$0 sm:$0xff] (!%p8430_p5) }
 0xab1   : > { %v8064_v5 = vsel %vm466_vm3, %v8062_v17, -inf  ;;  %v8083_v20 = vsel %vm466_vm3, %v8081_v13, -inf }
 0xab2   : > { %v8065_v52 = vmax.f32 %v8063_v48, %v8064_v5  ;;  %v8084_v37 = vmax.f32 %v8082_v63, %v8083_v20 }
 0xab4   : > { %v8066_v9 = vrot.slane %v8065_v52, 4  ;;  %v8085_v12 = vrot.slane %v8084_v37, 4 }
 0xab6   : > { %v8067_v45 = vmax.f32 %v8065_v52, %v8066_v9  ;;  %v8086_v57 = vmax.f32 %v8084_v37, %v8085_v12 }
 0xab8   : > { %v8068_v42 = vrot.slane %v8067_v45, 2  ;;  %v8087_v11 = vrot.slane %v8086_v57, 2 }
 0xaba   : > { %v8069_v32 = vmax.f32 %v8067_v45, %v8068_v42  ;;  %v8088_v61 = vmax.f32 %v8086_v57, %v8087_v11 }
 0xabc   : > { %v8070_v23 = vrot.slane %v8069_v32, 1  ;;  %v8089_v0 = vrot.slane %v8088_v61, 1 }
 0xabd   : > { %8100 = sbr.rel (%p8430_p5) target bundleno = 3194 (0xc7a), region = 72 }
 0xabe   : > { %v8071_v26 = vmax.f32 %v8069_v32, %v8070_v23  ;;  %v8090_v21 = vmax.f32 %v8088_v61, %v8089_v0 }
 0xac0   : > { %v8092_v3 = vsel %vm8091_vm13, %v8071_v26, %v8090_v21 }
 0xac1   : > { %v8094_v54 = vadd.f32 %v8093_v27, %v8092_v3 }
 0xac3   : > { %8096 = vst.msk [vmem:[#allocation3] sm:$0x3] %vm8095_vm14, %v8094_v54 }
 0xaca   : > { %v8101_v36 = vld [vmem:[#allocation3] sm:$0x3] }
 0xacb   : > { %8890 = vmatmul.mubr.msk.f32.vlgmr.msra.gmra.mrb[0].mxu0 %vm466_vm3, %v8101_v36 }
 0xb9e   : > { %v8182_v39 = vpop.f32.mrb[0].mxu0 }
 0xb9f   : > { %v8183_v51 = vadd.f32 %v8431_v47, %v8182_v39  ;;  %v8891_v55 = vpop.f32.mrb[1].mxu0 }
 0xba1   : > { %v8186_v62 = vmax.f32 %v8183_v51, 0.0 }
 0xba3   : > { %8901 = vmatmul.mubr.msk.f32.vlgmr.msra.gmra.mrb[0].mxu1 %vm466_vm3, %v8186_v62 }
 0xc76   : > { %v8267_v7 = vpop.f32.mrb[0].mxu1 }
 0xc77   : > { %v8268_v40 = vadd.f32 %v8433_v2, %v8267_v7  ;;  %v8902_v10 = vpop.f32.mrb[1].mxu1 }
 0xc79   : > { %8272 = vst.msk [vmem:[%s10125_s11] sm:$0x3] %vm8271_vm0, %v8268_v40 }
 0xc7a PF: > { %s23_s19 = sadd.s32 1, %s9062_s19  }
 0xc7b   : > { %p20_p6 = scmp.ge.s32.totalorder %s23_s19, 4  }
 0xc7d   :  { %22 = sbr.rel (!%p20_p6) target bundleno = 3 (0x3), region = 104 }

</bundles_post_ra>
